<compile_context>
chip_gen: v7x
topology: tpu7x:2x2x1
jax: 0.10.0
libtpu: 0.0.40
codegen_flags: <defaults>
</compile_context>

<pallas_src>
import math
import jax
import jax.numpy as jnp
from jax.experimental import pallas as pl
from jax.experimental.pallas import tpu as pltpu

# ---------------- model hyper-parameters (small, deterministic) ----------------
BATCH = 2
SEQ = 8
MODEL_DIM = 32
N_HEADS = 4
D_FF = 64
N_LAYERS = 2
EPS = 1e-6
D_HEAD = MODEL_DIM // N_HEADS
NEG_INF = -1e9

MM_DTYPE = jnp.bfloat16          # matmul operand dtype (f32 accumulation everywhere)
VEC_ROWS_PER_LAYER = 3           # [attn_bias_fold, b1_fold, b2] per layer


# =============================== kernel ========================================

def _normalize(x):
    """(x - mean) / (std + eps) with unbiased std (torch x.std(-1)); affine folded
    into the following weights at pack time.  rsqrt(var + eps^2) ~= 1/(std + eps)."""
    mean = jnp.mean(x, axis=-1, keepdims=True)
    xc = x - mean
    var = jnp.sum(xc * xc, axis=-1, keepdims=True) * jnp.float32(1.0 / (MODEL_DIM - 1))
    return xc * jax.lax.rsqrt(var + jnp.float32(EPS * EPS))


def _encoder_kernel(x_ref, bias_ref, wqk_ref, wvo_ref, w1_ref, w2_ref,
                    bq_ref, vec_ref, o_ref):
    # x_ref:    (R, D) activation rows (R = B*S grid-free, R = S with the batch grid)
    # bias_ref: (R, K) additive attention bias (0 allowed / -1e9 masked)
    # wqk_ref:  (L*2*H, D, DH) bf16   [per-head Wq (LN1-gamma & 1/sqrt(dk) folded), Wk]
    # wvo_ref:  (L*H, D, D)    bf16   diag(g1) @ Wv_h @ Wo_h
    # w1_ref:   (L, D, D_FF)   bf16   diag(g2) @ W1
    # w2_ref:   (L, D_FF, D)   bf16
    # bq_ref:   (L*H, 1, DH)   f32    ((beta1 @ Wq + bq) / sqrt(dk)) per head
    # vec_ref:  (3L+2, D_FF)   f32    per-layer [attn_b, b1', b2] rows + final LN g, b
    x = x_ref[...].astype(jnp.float32)
    bias = bias_ref[...]

    for l in range(N_LAYERS):                          # static unroll over layers
        # -------- self-attention sublayer (pre-norm folded into weights) --------
        xn = _normalize(x).astype(MM_DTYPE)
        attn = jnp.zeros_like(x)
        for h in range(N_HEADS):                       # static unroll over heads
            q = jnp.dot(xn, wqk_ref[(2 * l) * N_HEADS + h],
                        preferred_element_type=jnp.float32) + bq_ref[l * N_HEADS + h]
            k = jnp.dot(xn, wqk_ref[(2 * l + 1) * N_HEADS + h],
                        preferred_element_type=jnp.float32)
            s = jax.lax.dot_general(q.astype(MM_DTYPE), k.astype(MM_DTYPE),
                                    (((1,), (1,)), ((), ())),
                                    preferred_element_type=jnp.float32)
            s = s + bias
            s = s - jnp.max(s, axis=-1, keepdims=True)
            e = jnp.exp(s)
            p = e * pl.reciprocal(jnp.sum(e, axis=-1, keepdims=True), approx=True)
            # context directly in model dim: P_h @ (xn @ (diag(g1) Wv_h Wo_h))
            vo = jnp.dot(xn, wvo_ref[l * N_HEADS + h],
                         preferred_element_type=jnp.float32)
            attn = attn + jnp.dot(p.astype(MM_DTYPE), vo.astype(MM_DTYPE),
                                  preferred_element_type=jnp.float32)
        # folded bias: bo + (beta1 @ Wv + bv) @ Wo
        x = x + attn + vec_ref[3 * l:3 * l + 1, 0:MODEL_DIM]

        # -------- feed-forward sublayer (pre-norm folded into W1/b1) --------
        xn = _normalize(x).astype(MM_DTYPE)
        hdn = jnp.dot(xn, w1_ref[l], preferred_element_type=jnp.float32) \
            + vec_ref[3 * l + 1:3 * l + 2, :]
        hdn = jnp.maximum(hdn, 0.0).astype(MM_DTYPE)
        x = x + jnp.dot(hdn, w2_ref[l], preferred_element_type=jnp.float32) \
            + vec_ref[3 * l + 2:3 * l + 3, 0:MODEL_DIM]

    # -------- final LayerNorm (explicit affine) --------
    g = vec_ref[3 * N_LAYERS:3 * N_LAYERS + 1, 0:MODEL_DIM]
    b = vec_ref[3 * N_LAYERS + 1:3 * N_LAYERS + 2, 0:MODEL_DIM]
    o_ref[...] = (g * _normalize(x) + b).astype(o_ref.dtype)


# =============================== packing =======================================

def _pack_params(params):
    """Fold LN1/LN2 affine, 1/sqrt(dk) and Wv@Wo into the weights; split heads at
    pack time; pack all bias / LN vectors into one f32 slab.

    Exactness notes:
      * q = LN1(x)@Wq + bq  ==  norm(x) @ (diag(g1) Wq) + (beta1@Wq + bq)   (all /sqrt(dk))
      * the K bias (beta1@Wk + bk) only adds a per-query-row constant to the scores;
        softmax is shift invariant, so it is dropped.
      * concat_h(P_h V_h) Wo + bo == sum_h P_h (norm(x) diag(g1) Wv_h Wo_h)
                                     + [bo + (beta1@Wv + bv)@Wo]   (P rows sum to 1).
    """
    scale = jnp.float32(1.0 / math.sqrt(D_HEAD))
    layers = params["layers"]

    wqk_blocks, wvo_blocks, bq_blocks = [], [], []
    w1_list, w2_list, vec_rows = [], [], []

    def pad_row(v):                                  # (1, w) -> (1, D_FF)
        return jnp.pad(v, ((0, 0), (0, D_FF - v.shape[1])))

    for lp in layers:
        g1, be1 = lp["ln1_g"], lp["ln1_b"]           # (1, D)
        g2, be2 = lp["ln2_g"], lp["ln2_b"]
        wq_f = lp["wq"] * g1.T * scale               # diag(g1) Wq / sqrt(dk)
        wk_f = lp["wk"] * g1.T
        wv_f = lp["wv"] * g1.T
        bq_f = (be1 @ lp["wq"] + lp["bq"]) * scale   # (1, D)

        for h in range(N_HEADS):                     # q weights, head-major
            lo, hi = h * D_HEAD, (h + 1) * D_HEAD
            wqk_blocks.append(wq_f[:, lo:hi])
        for h in range(N_HEADS):                     # k weights, head-major
            lo, hi = h * D_HEAD, (h + 1) * D_HEAD
            wqk_blocks.append(wk_f[:, lo:hi])
        for h in range(N_HEADS):
            lo, hi = h * D_HEAD, (h + 1) * D_HEAD
            wvo_blocks.append(wv_f[:, lo:hi] @ lp["wo"][lo:hi, :])   # (D, D)
            bq_blocks.append(bq_f[:, lo:hi])                          # (1, DH)

        attn_b = lp["bo"] + (be1 @ lp["wv"] + lp["bv"]) @ lp["wo"]    # (1, D)
        w1_list.append(lp["w1"] * g2.T)                               # diag(g2) W1
        w2_list.append(lp["w2"])
        b1_f = be2 @ lp["w1"] + lp["b1"]                              # (1, D_FF)
        vec_rows += [pad_row(attn_b), b1_f, pad_row(lp["b2"])]

    vec_rows += [pad_row(params["norm_g"]), pad_row(params["norm_b"])]

    wqk = jnp.stack(wqk_blocks).astype(MM_DTYPE)      # (L*2*H, D, DH)
    wvo = jnp.stack(wvo_blocks).astype(MM_DTYPE)      # (L*H, D, D)
    w1 = jnp.stack(w1_list).astype(MM_DTYPE)          # (L, D, D_FF)
    w2 = jnp.stack(w2_list).astype(MM_DTYPE)          # (L, D_FF, D)
    bq = jnp.stack(bq_blocks)                         # (L*H, 1, DH)  f32
    vec = jnp.concatenate(vec_rows, axis=0)           # (3L+2, D_FF)  f32
    return wqk, wvo, w1, w2, bq, vec


# =============================== masks =========================================

def _per_batch_bias(mask, B, S):
    """(B,1,S) key mask -> (B, S, S) additive bias per batch element."""
    key_ok = mask[:, 0, :].astype(jnp.float32)                      # (B, Sk)
    row = jnp.where(key_ok > 0, jnp.float32(0.0), jnp.float32(NEG_INF))
    return jnp.broadcast_to(row[:, None, :], (B, S, S))


def _block_diag_bias(mask, B, S):
    """(B,1,S) key mask -> (B*S, B*S) block-diagonal additive bias (folded batch)."""
    same = jnp.eye(B, dtype=jnp.float32)
    key_ok = mask[:, 0, :].astype(jnp.float32)
    allowed = same[:, :, None] * key_ok[None, :, :]                  # (Bq, Bk, Sk)
    allowed = jnp.broadcast_to(allowed[:, None, :, :], (B, S, B, S)).reshape(B * S, B * S)
    return jnp.where(allowed > 0, jnp.float32(0.0), jnp.float32(NEG_INF))


# =============================== wrapper =======================================

def _tensorcores_per_chip() -> int:
    """Best-effort: v7x exposes 2 TensorCores per chip (parallel batch grid pays off);
    v5e / v6e have 1 and prefer the grid-free single invocation."""
    try:
        dev = jax.devices()[0]
        if dev.platform != "tpu":
            return 1
        kind = str(getattr(dev, "device_kind", "")).lower()
    except Exception:
        return 1
    return 2 if ("v7" in kind or "7x" in kind) else 1


def _replicated_spec(arr):
    n = arr.ndim
    return pl.BlockSpec(arr.shape, lambda b: (0,) * n)


def encoder_forward(params, x, mask):
    """x: (B, S, D) float32, mask: (B, 1, S) in {0,1} (1 = key may be attended).
    NOTE: every query row must have at least one allowed key (true for this mask);
    a fully-masked row would yield a uniform softmax rather than NaN."""
    B, S, D = x.shape
    weights = _pack_params(params)
    x_flat = x.reshape(B * S, D)

    # VMEM-resident weights guard: revisit (pipelined grid + vmem_limit_bytes) before
    # scaling toward real model sizes -- v7x has only 64 MiB physical VMEM.
    packed_bytes = sum(math.prod(w.shape) * w.dtype.itemsize for w in weights)
    assert packed_bytes < (8 << 20), "switch to a pipelined grid: weights too large"

    if B >= 2 and _tensorcores_per_chip() >= 2:
        # v7x: one batch element per grid step, "parallel" so each TensorCore takes
        # half the batch.  Weights use constant index maps -> DMA'd once, resident.
        bias = _per_batch_bias(mask, B, S).reshape(B * S, S)
        row_spec = pl.BlockSpec((S, D), lambda b: (b, 0))
        in_specs = [row_spec, pl.BlockSpec((S, S), lambda b: (b, 0))] + \
                   [_replicated_spec(w) for w in weights]
        out = pl.pallas_call(
            _encoder_kernel,
            out_shape=jax.ShapeDtypeStruct((B * S, D), x.dtype),
            grid=(B,),
            in_specs=in_specs,
            out_specs=row_spec,
            compiler_params=pltpu.CompilerParams(dimension_semantics=("parallel",)),
        )(x_flat, bias, *weights)
    else:
        # v5e / v6e (1 TensorCore): single grid-free invocation, batch folded into the
        # sublane axis, cross-batch attention blocked by the block-diagonal bias.
        bias = _block_diag_bias(mask, B, S)
        vspec = pl.BlockSpec(memory_space=pltpu.MemorySpace.VMEM)
        out = pl.pallas_call(
            _encoder_kernel,
            out_shape=jax.ShapeDtypeStruct((B * S, D), x.dtype),
            in_specs=[vspec] * (2 + len(weights)),
            out_specs=vspec,
        )(x_flat, bias, *weights)
    return out.reshape(B, S, D)


# =============================== reference =====================================

def _reference_forward(params, x, mask):
    """Pure-JAX f32 mirror of the PyTorch Encoder (pre-norm layers + final LN)."""
    def layer_norm(t, g, b):
        mean = t.mean(-1, keepdims=True)
        var = ((t - mean) ** 2).sum(-1, keepdims=True) / (t.shape[-1] - 1)
        return g * (t - mean) / (jnp.sqrt(var) + EPS) + b

    B, S, D = x.shape

    def mha(xn, lp):
        def split(t):
            return t.reshape(B, S, N_HEADS, D_HEAD).transpose(0, 2, 1, 3)
        q = split(xn @ lp["wq"] + lp["bq"])
        k = split(xn @ lp["wk"] + lp["bk"])
        v = split(xn @ lp["wv"] + lp["bv"])
        s = jnp.einsum("bhqd,bhkd->bhqk", q, k) / math.sqrt(D_HEAD)
        s = jnp.where(mask[:, :, None, :] == 0, NEG_INF, s)
        p = jax.nn.softmax(s, axis=-1)
        ctx = jnp.einsum("bhqk,bhkd->bhqd", p, v)
        ctx = ctx.transpose(0, 2, 1, 3).reshape(B, S, D)
        return ctx @ lp["wo"] + lp["bo"]

    for lp in params["layers"]:
        x = x + mha(layer_norm(x, lp["ln1_g"], lp["ln1_b"]), lp)
        h = jnp.maximum(layer_norm(x, lp["ln2_g"], lp["ln2_b"]) @ lp["w1"] + lp["b1"], 0.0)
        x = x + h @ lp["w2"] + lp["b2"]
    return layer_norm(x, params["norm_g"], params["norm_b"])


# =============================== parameters ====================================

def init_params(key):
    def linear(key, d_in, d_out):
        kw, kb = jax.random.split(key)
        lim = 1.0 / math.sqrt(d_in)
        w = jax.random.uniform(kw, (d_in, d_out), jnp.float32, -lim, lim)
        b = jax.random.uniform(kb, (1, d_out), jnp.float32, -lim, lim)
        return w, b

    layers = []
    for _ in range(N_LAYERS):
        key, *ks = jax.random.split(key, 7)
        wq, bq = linear(ks[0], MODEL_DIM, MODEL_DIM)
        wk, bk = linear(ks[1], MODEL_DIM, MODEL_DIM)
        wv, bv = linear(ks[2], MODEL_DIM, MODEL_DIM)
        wo, bo = linear(ks[3], MODEL_DIM, MODEL_DIM)
        w1, b1 = linear(ks[4], MODEL_DIM, D_FF)
        w2, b2 = linear(ks[5], D_FF, MODEL_DIM)
        layers.append(dict(
            ln1_g=jnp.ones((1, MODEL_DIM), jnp.float32),
            ln1_b=jnp.zeros((1, MODEL_DIM), jnp.float32),
            ln2_g=jnp.ones((1, MODEL_DIM), jnp.float32),
            ln2_b=jnp.zeros((1, MODEL_DIM), jnp.float32),
            wq=wq, bq=bq, wk=wk, bk=bk, wv=wv, bv=bv, wo=wo, bo=bo,
            w1=w1, b1=b1, w2=w2, b2=b2,
        ))
    return dict(
        layers=layers,
        norm_g=jnp.ones((1, MODEL_DIM), jnp.float32),
        norm_b=jnp.zeros((1, MODEL_DIM), jnp.float32),
    )


# =============================== main ==========================================

if __name__ == "__main__":
    key = jax.random.PRNGKey(0)
    kx, kp = jax.random.split(key)

    x = jax.random.normal(kx, (BATCH, SEQ, MODEL_DIM), jnp.float32)
    # mask: second batch element cannot attend to its last two positions
    mask = jnp.ones((BATCH, 1, SEQ), jnp.float32)
    mask = mask.at[1, 0, -2:].set(0.0)

    params = init_params(kp)

    out = jax.jit(encoder_forward)(params, x, mask)
    out = jax.block_until_ready(out)

    assert out.shape == (BATCH, SEQ, MODEL_DIM) and out.dtype == jnp.float32
    assert bool(jnp.all(jnp.isfinite(out)))

    # numerical sanity vs. a pure-JAX f32 reference (kernel uses bf16 matmul operands,
    # so allow a generous margin; a structural bug would show up as O(1) deviations).
    ref = _reference_forward(params, x, mask)
    max_err = float(jnp.max(jnp.abs(out - ref)))
    assert max_err < 0.25, f"kernel deviates from reference: max_err={max_err}"

    print("KERNEL_OK")
</pallas_src>

<mosaic_0001>
module attributes {stable_mosaic.version = 11 : i64} {
  func.func @_encoder_kernel(%arg0: memref<16x32xf32, #tpu.memory_space<vmem>>, %arg1: memref<16x16xf32, #tpu.memory_space<vmem>>, %arg2: memref<16x32x8xbf16, #tpu.memory_space<vmem>>, %arg3: memref<8x32x32xbf16, #tpu.memory_space<vmem>>, %arg4: memref<2x32x64xbf16, #tpu.memory_space<vmem>>, %arg5: memref<2x64x32xbf16, #tpu.memory_space<vmem>>, %arg6: memref<8x1x8xf32, #tpu.memory_space<vmem>>, %arg7: memref<8x64xf32, #tpu.memory_space<vmem>>, %arg8: memref<16x32xf32, #tpu.memory_space<vmem>>) attributes {dimension_semantics = [], scalar_prefetch = 0 : i64, scratch_operands = 0 : i64, tpu.core_type = #tpu.core_type<tc>} {
    %c0 = arith.constant 0 : index
    %c0_0 = arith.constant 0 : index
    %0 = vector.load %arg0[%c0, %c0_0] : memref<16x32xf32, #tpu.memory_space<vmem>>, vector<16x32xf32>
    %c0_1 = arith.constant 0 : index
    %c0_2 = arith.constant 0 : index
    %1 = vector.load %arg1[%c0_1, %c0_2] : memref<16x16xf32, #tpu.memory_space<vmem>>, vector<16x16xf32>
    %cst = arith.constant dense<0.000000e+00> : vector<16xf32>
    %2 = vector.multi_reduction <add>, %0, %cst [1] : vector<16x32xf32> to vector<16xf32>
    %3 = vector.shape_cast %2 : vector<16xf32> to vector<16x1xf32>
    %cst_3 = arith.constant 3.200000e+01 : f32
    %4 = vector.broadcast %cst_3 : f32 to vector<16x1xf32>
    %5 = arith.divf %3, %4 : vector<16x1xf32>
    %6 = vector.broadcast %5 : vector<16x1xf32> to vector<16x32xf32>
    %7 = arith.subf %0, %6 : vector<16x32xf32>
    %8 = arith.mulf %7, %7 : vector<16x32xf32>
    %cst_4 = arith.constant dense<0.000000e+00> : vector<16xf32>
    %9 = vector.multi_reduction <add>, %8, %cst_4 [1] : vector<16x32xf32> to vector<16xf32>
    %10 = vector.shape_cast %9 : vector<16xf32> to vector<16x1xf32>
    %cst_5 = arith.constant 0.0322580636 : f32
    %11 = vector.broadcast %cst_5 : f32 to vector<16x1xf32>
    %12 = arith.mulf %10, %11 : vector<16x1xf32>
    %cst_6 = arith.constant 9.99999996E-13 : f32
    %13 = vector.broadcast %cst_6 : f32 to vector<16x1xf32>
    %14 = arith.addf %12, %13 : vector<16x1xf32>
    %15 = math.rsqrt %14 : vector<16x1xf32>
    %16 = vector.broadcast %15 : vector<16x1xf32> to vector<16x32xf32>
    %17 = arith.mulf %7, %16 : vector<16x32xf32>
    %18 = arith.truncf %17 : vector<16x32xf32> to vector<16x32xbf16>
    %cst_7 = arith.constant 0.000000e+00 : f32
    %19 = vector.broadcast %cst_7 : f32 to vector<16x32xf32>
    %c0_8 = arith.constant 0 : index
    %c0_9 = arith.constant 0 : index
    %c0_10 = arith.constant 0 : index
    %20 = vector.load %arg2[%c0_8, %c0_9, %c0_10] : memref<16x32x8xbf16, #tpu.memory_space<vmem>>, vector<1x32x8xbf16>
    %21 = vector.shape_cast %20 : vector<1x32x8xbf16> to vector<32x8xbf16>
    %cst_11 = arith.constant dense<0.000000e+00> : vector<16x8xf32>
    %22 = tpu.matmul %18, %21, %cst_11 {dimension_numbers = #tpu.dot_dimension_numbers<[1], [0], [0], [1], [0, 0, 1, 1], [], []>} : vector<16x32xbf16>, vector<32x8xbf16>, vector<16x8xf32> -> vector<16x8xf32>
    %c0_12 = arith.constant 0 : index
    %c0_13 = arith.constant 0 : index
    %c0_14 = arith.constant 0 : index
    %23 = vector.load %arg6[%c0_12, %c0_13, %c0_14] : memref<8x1x8xf32, #tpu.memory_space<vmem>>, vector<1x1x8xf32>
    %24 = vector.shape_cast %23 : vector<1x1x8xf32> to vector<1x8xf32>
    %25 = vector.broadcast %24 : vector<1x8xf32> to vector<16x8xf32>
    %26 = arith.addf %22, %25 : vector<16x8xf32>
    %c4 = arith.constant 4 : index
    %c0_15 = arith.constant 0 : index
    %c0_16 = arith.constant 0 : index
    %27 = vector.load %arg2[%c4, %c0_15, %c0_16] : memref<16x32x8xbf16, #tpu.memory_space<vmem>>, vector<1x32x8xbf16>
    %28 = vector.shape_cast %27 : vector<1x32x8xbf16> to vector<32x8xbf16>
    %cst_17 = arith.constant dense<0.000000e+00> : vector<16x8xf32>
    %29 = tpu.matmul %18, %28, %cst_17 {dimension_numbers = #tpu.dot_dimension_numbers<[1], [0], [0], [1], [0, 0, 1, 1], [], []>} : vector<16x32xbf16>, vector<32x8xbf16>, vector<16x8xf32> -> vector<16x8xf32>
    %30 = arith.truncf %26 : vector<16x8xf32> to vector<16x8xbf16>
    %31 = arith.truncf %29 : vector<16x8xf32> to vector<16x8xbf16>
    %cst_18 = arith.constant dense<0.000000e+00> : vector<16x16xf32>
    %32 = tpu.matmul %30, %31, %cst_18 {dimension_numbers = #tpu.dot_dimension_numbers<[1], [1], [0], [0], [0, 0, 1, 0], [], []>} : vector<16x8xbf16>, vector<16x8xbf16>, vector<16x16xf32> -> vector<16x16xf32>
    %33 = arith.addf %32, %1 : vector<16x16xf32>
    %cst_19 = arith.constant dense<0xFF800000> : vector<16xf32>
    %34 = vector.multi_reduction <maximumf>, %33, %cst_19 [1] : vector<16x16xf32> to vector<16xf32>
    %35 = vector.shape_cast %34 : vector<16xf32> to vector<16x1xf32>
    %36 = vector.broadcast %35 : vector<16x1xf32> to vector<16x16xf32>
    %37 = arith.subf %33, %36 : vector<16x16xf32>
    %38 = math.exp %37 : vector<16x16xf32>
    %cst_20 = arith.constant dense<0.000000e+00> : vector<16xf32>
    %39 = vector.multi_reduction <add>, %38, %cst_20 [1] : vector<16x16xf32> to vector<16xf32>
    %40 = vector.shape_cast %39 : vector<16xf32> to vector<16x1xf32>
    %41 = tpu.reciprocal %40 {approx = true} : vector<16x1xf32> -> vector<16x1xf32>
    %42 = vector.broadcast %41 : vector<16x1xf32> to vector<16x16xf32>
    %43 = arith.mulf %38, %42 : vector<16x16xf32>
    %c0_21 = arith.constant 0 : index
    %c0_22 = arith.constant 0 : index
    %c0_23 = arith.constant 0 : index
    %44 = vector.load %arg3[%c0_21, %c0_22, %c0_23] : memref<8x32x32xbf16, #tpu.memory_space<vmem>>, vector<1x32x32xbf16>
    %45 = vector.shape_cast %44 : vector<1x32x32xbf16> to vector<32x32xbf16>
    %cst_24 = arith.constant dense<0.000000e+00> : vector<16x32xf32>
    %46 = tpu.matmul %18, %45, %cst_24 {dimension_numbers = #tpu.dot_dimension_numbers<[1], [0], [0], [1], [0, 0, 1, 1], [], []>} : vector<16x32xbf16>, vector<32x32xbf16>, vector<16x32xf32> -> vector<16x32xf32>
    %47 = arith.truncf %43 : vector<16x16xf32> to vector<16x16xbf16>
    %48 = arith.truncf %46 : vector<16x32xf32> to vector<16x32xbf16>
    %cst_25 = arith.constant dense<0.000000e+00> : vector<16x32xf32>
    %49 = tpu.matmul %47, %48, %cst_25 {dimension_numbers = #tpu.dot_dimension_numbers<[1], [0], [0], [1], [0, 0, 1, 1], [], []>} : vector<16x16xbf16>, vector<16x32xbf16>, vector<16x32xf32> -> vector<16x32xf32>
    %50 = arith.addf %19, %49 : vector<16x32xf32>
    %c1 = arith.constant 1 : index
    %c0_26 = arith.constant 0 : index
    %c0_27 = arith.constant 0 : index
    %51 = vector.load %arg2[%c1, %c0_26, %c0_27] : memref<16x32x8xbf16, #tpu.memory_space<vmem>>, vector<1x32x8xbf16>
    %52 = vector.shape_cast %51 : vector<1x32x8xbf16> to vector<32x8xbf16>
    %cst_28 = arith.constant dense<0.000000e+00> : vector<16x8xf32>
    %53 = tpu.matmul %18, %52, %cst_28 {dimension_numbers = #tpu.dot_dimension_numbers<[1], [0], [0], [1], [0, 0, 1, 1], [], []>} : vector<16x32xbf16>, vector<32x8xbf16>, vector<16x8xf32> -> vector<16x8xf32>
    %c1_29 = arith.constant 1 : index
    %c0_30 = arith.constant 0 : index
    %c0_31 = arith.constant 0 : index
    %54 = vector.load %arg6[%c1_29, %c0_30, %c0_31] : memref<8x1x8xf32, #tpu.memory_space<vmem>>, vector<1x1x8xf32>
    %55 = vector.shape_cast %54 : vector<1x1x8xf32> to vector<1x8xf32>
    %56 = vector.broadcast %55 : vector<1x8xf32> to vector<16x8xf32>
    %57 = arith.addf %53, %56 : vector<16x8xf32>
    %c5 = arith.constant 5 : index
    %c0_32 = arith.constant 0 : index
    %c0_33 = arith.constant 0 : index
    %58 = vector.load %arg2[%c5, %c0_32, %c0_33] : memref<16x32x8xbf16, #tpu.memory_space<vmem>>, vector<1x32x8xbf16>
    %59 = vector.shape_cast %58 : vector<1x32x8xbf16> to vector<32x8xbf16>
    %cst_34 = arith.constant dense<0.000000e+00> : vector<16x8xf32>
    %60 = tpu.matmul %18, %59, %cst_34 {dimension_numbers = #tpu.dot_dimension_numbers<[1], [0], [0], [1], [0, 0, 1, 1], [], []>} : vector<16x32xbf16>, vector<32x8xbf16>, vector<16x8xf32> -> vector<16x8xf32>
    %61 = arith.truncf %57 : vector<16x8xf32> to vector<16x8xbf16>
    %62 = arith.truncf %60 : vector<16x8xf32> to vector<16x8xbf16>
    %cst_35 = arith.constant dense<0.000000e+00> : vector<16x16xf32>
    %63 = tpu.matmul %61, %62, %cst_35 {dimension_numbers = #tpu.dot_dimension_numbers<[1], [1], [0], [0], [0, 0, 1, 0], [], []>} : vector<16x8xbf16>, vector<16x8xbf16>, vector<16x16xf32> -> vector<16x16xf32>
    %64 = arith.addf %63, %1 : vector<16x16xf32>
    %cst_36 = arith.constant dense<0xFF800000> : vector<16xf32>
    %65 = vector.multi_reduction <maximumf>, %64, %cst_36 [1] : vector<16x16xf32> to vector<16xf32>
    %66 = vector.shape_cast %65 : vector<16xf32> to vector<16x1xf32>
    %67 = vector.broadcast %66 : vector<16x1xf32> to vector<16x16xf32>
    %68 = arith.subf %64, %67 : vector<16x16xf32>
    %69 = math.exp %68 : vector<16x16xf32>
    %cst_37 = arith.constant dense<0.000000e+00> : vector<16xf32>
    %70 = vector.multi_reduction <add>, %69, %cst_37 [1] : vector<16x16xf32> to vector<16xf32>
    %71 = vector.shape_cast %70 : vector<16xf32> to vector<16x1xf32>
    %72 = tpu.reciprocal %71 {approx = true} : vector<16x1xf32> -> vector<16x1xf32>
    %73 = vector.broadcast %72 : vector<16x1xf32> to vector<16x16xf32>
    %74 = arith.mulf %69, %73 : vector<16x16xf32>
    %c1_38 = arith.constant 1 : index
    %c0_39 = arith.constant 0 : index
    %c0_40 = arith.constant 0 : index
    %75 = vector.load %arg3[%c1_38, %c0_39, %c0_40] : memref<8x32x32xbf16, #tpu.memory_space<vmem>>, vector<1x32x32xbf16>
    %76 = vector.shape_cast %75 : vector<1x32x32xbf16> to vector<32x32xbf16>
    %cst_41 = arith.constant dense<0.000000e+00> : vector<16x32xf32>
    %77 = tpu.matmul %18, %76, %cst_41 {dimension_numbers = #tpu.dot_dimension_numbers<[1], [0], [0], [1], [0, 0, 1, 1], [], []>} : vector<16x32xbf16>, vector<32x32xbf16>, vector<16x32xf32> -> vector<16x32xf32>
    %78 = arith.truncf %74 : vector<16x16xf32> to vector<16x16xbf16>
    %79 = arith.truncf %77 : vector<16x32xf32> to vector<16x32xbf16>
    %cst_42 = arith.constant dense<0.000000e+00> : vector<16x32xf32>
    %80 = tpu.matmul %78, %79, %cst_42 {dimension_numbers = #tpu.dot_dimension_numbers<[1], [0], [0], [1], [0, 0, 1, 1], [], []>} : vector<16x16xbf16>, vector<16x32xbf16>, vector<16x32xf32> -> vector<16x32xf32>
    %81 = arith.addf %50, %80 : vector<16x32xf32>
    %c2 = arith.constant 2 : index
    %c0_43 = arith.constant 0 : index
    %c0_44 = arith.constant 0 : index
    %82 = vector.load %arg2[%c2, %c0_43, %c0_44] : memref<16x32x8xbf16, #tpu.memory_space<vmem>>, vector<1x32x8xbf16>
    %83 = vector.shape_cast %82 : vector<1x32x8xbf16> to vector<32x8xbf16>
    %cst_45 = arith.constant dense<0.000000e+00> : vector<16x8xf32>
    %84 = tpu.matmul %18, %83, %cst_45 {dimension_numbers = #tpu.dot_dimension_numbers<[1], [0], [0], [1], [0, 0, 1, 1], [], []>} : vector<16x32xbf16>, vector<32x8xbf16>, vector<16x8xf32> -> vector<16x8xf32>
    %c2_46 = arith.constant 2 : index
    %c0_47 = arith.constant 0 : index
    %c0_48 = arith.constant 0 : index
    %85 = vector.load %arg6[%c2_46, %c0_47, %c0_48] : memref<8x1x8xf32, #tpu.memory_space<vmem>>, vector<1x1x8xf32>
    %86 = vector.shape_cast %85 : vector<1x1x8xf32> to vector<1x8xf32>
    %87 = vector.broadcast %86 : vector<1x8xf32> to vector<16x8xf32>
    %88 = arith.addf %84, %87 : vector<16x8xf32>
    %c6 = arith.constant 6 : index
    %c0_49 = arith.constant 0 : index
    %c0_50 = arith.constant 0 : index
    %89 = vector.load %arg2[%c6, %c0_49, %c0_50] : memref<16x32x8xbf16, #tpu.memory_space<vmem>>, vector<1x32x8xbf16>
    %90 = vector.shape_cast %89 : vector<1x32x8xbf16> to vector<32x8xbf16>
    %cst_51 = arith.constant dense<0.000000e+00> : vector<16x8xf32>
    %91 = tpu.matmul %18, %90, %cst_51 {dimension_numbers = #tpu.dot_dimension_numbers<[1], [0], [0], [1], [0, 0, 1, 1], [], []>} : vector<16x32xbf16>, vector<32x8xbf16>, vector<16x8xf32> -> vector<16x8xf32>
    %92 = arith.truncf %88 : vector<16x8xf32> to vector<16x8xbf16>
    %93 = arith.truncf %91 : vector<16x8xf32> to vector<16x8xbf16>
    %cst_52 = arith.constant dense<0.000000e+00> : vector<16x16xf32>
    %94 = tpu.matmul %92, %93, %cst_52 {dimension_numbers = #tpu.dot_dimension_numbers<[1], [1], [0], [0], [0, 0, 1, 0], [], []>} : vector<16x8xbf16>, vector<16x8xbf16>, vector<16x16xf32> -> vector<16x16xf32>
    %95 = arith.addf %94, %1 : vector<16x16xf32>
    %cst_53 = arith.constant dense<0xFF800000> : vector<16xf32>
    %96 = vector.multi_reduction <maximumf>, %95, %cst_53 [1] : vector<16x16xf32> to vector<16xf32>
    %97 = vector.shape_cast %96 : vector<16xf32> to vector<16x1xf32>
    %98 = vector.broadcast %97 : vector<16x1xf32> to vector<16x16xf32>
    %99 = arith.subf %95, %98 : vector<16x16xf32>
    %100 = math.exp %99 : vector<16x16xf32>
    %cst_54 = arith.constant dense<0.000000e+00> : vector<16xf32>
    %101 = vector.multi_reduction <add>, %100, %cst_54 [1] : vector<16x16xf32> to vector<16xf32>
    %102 = vector.shape_cast %101 : vector<16xf32> to vector<16x1xf32>
    %103 = tpu.reciprocal %102 {approx = true} : vector<16x1xf32> -> vector<16x1xf32>
    %104 = vector.broadcast %103 : vector<16x1xf32> to vector<16x16xf32>
    %105 = arith.mulf %100, %104 : vector<16x16xf32>
    %c2_55 = arith.constant 2 : index
    %c0_56 = arith.constant 0 : index
    %c0_57 = arith.constant 0 : index
    %106 = vector.load %arg3[%c2_55, %c0_56, %c0_57] : memref<8x32x32xbf16, #tpu.memory_space<vmem>>, vector<1x32x32xbf16>
    %107 = vector.shape_cast %106 : vector<1x32x32xbf16> to vector<32x32xbf16>
    %cst_58 = arith.constant dense<0.000000e+00> : vector<16x32xf32>
    %108 = tpu.matmul %18, %107, %cst_58 {dimension_numbers = #tpu.dot_dimension_numbers<[1], [0], [0], [1], [0, 0, 1, 1], [], []>} : vector<16x32xbf16>, vector<32x32xbf16>, vector<16x32xf32> -> vector<16x32xf32>
    %109 = arith.truncf %105 : vector<16x16xf32> to vector<16x16xbf16>
    %110 = arith.truncf %108 : vector<16x32xf32> to vector<16x32xbf16>
    %cst_59 = arith.constant dense<0.000000e+00> : vector<16x32xf32>
    %111 = tpu.matmul %109, %110, %cst_59 {dimension_numbers = #tpu.dot_dimension_numbers<[1], [0], [0], [1], [0, 0, 1, 1], [], []>} : vector<16x16xbf16>, vector<16x32xbf16>, vector<16x32xf32> -> vector<16x32xf32>
    %112 = arith.addf %81, %111 : vector<16x32xf32>
    %c3 = arith.constant 3 : index
    %c0_60 = arith.constant 0 : index
    %c0_61 = arith.constant 0 : index
    %113 = vector.load %arg2[%c3, %c0_60, %c0_61] : memref<16x32x8xbf16, #tpu.memory_space<vmem>>, vector<1x32x8xbf16>
    %114 = vector.shape_cast %113 : vector<1x32x8xbf16> to vector<32x8xbf16>
    %cst_62 = arith.constant dense<0.000000e+00> : vector<16x8xf32>
    %115 = tpu.matmul %18, %114, %cst_62 {dimension_numbers = #tpu.dot_dimension_numbers<[1], [0], [0], [1], [0, 0, 1, 1], [], []>} : vector<16x32xbf16>, vector<32x8xbf16>, vector<16x8xf32> -> vector<16x8xf32>
    %c3_63 = arith.constant 3 : index
    %c0_64 = arith.constant 0 : index
    %c0_65 = arith.constant 0 : index
    %116 = vector.load %arg6[%c3_63, %c0_64, %c0_65] : memref<8x1x8xf32, #tpu.memory_space<vmem>>, vector<1x1x8xf32>
    %117 = vector.shape_cast %116 : vector<1x1x8xf32> to vector<1x8xf32>
    %118 = vector.broadcast %117 : vector<1x8xf32> to vector<16x8xf32>
    %119 = arith.addf %115, %118 : vector<16x8xf32>
    %c7 = arith.constant 7 : index
    %c0_66 = arith.constant 0 : index
    %c0_67 = arith.constant 0 : index
    %120 = vector.load %arg2[%c7, %c0_66, %c0_67] : memref<16x32x8xbf16, #tpu.memory_space<vmem>>, vector<1x32x8xbf16>
    %121 = vector.shape_cast %120 : vector<1x32x8xbf16> to vector<32x8xbf16>
    %cst_68 = arith.constant dense<0.000000e+00> : vector<16x8xf32>
    %122 = tpu.matmul %18, %121, %cst_68 {dimension_numbers = #tpu.dot_dimension_numbers<[1], [0], [0], [1], [0, 0, 1, 1], [], []>} : vector<16x32xbf16>, vector<32x8xbf16>, vector<16x8xf32> -> vector<16x8xf32>
    %123 = arith.truncf %119 : vector<16x8xf32> to vector<16x8xbf16>
    %124 = arith.truncf %122 : vector<16x8xf32> to vector<16x8xbf16>
    %cst_69 = arith.constant dense<0.000000e+00> : vector<16x16xf32>
    %125 = tpu.matmul %123, %124, %cst_69 {dimension_numbers = #tpu.dot_dimension_numbers<[1], [1], [0], [0], [0, 0, 1, 0], [], []>} : vector<16x8xbf16>, vector<16x8xbf16>, vector<16x16xf32> -> vector<16x16xf32>
    %126 = arith.addf %125, %1 : vector<16x16xf32>
    %cst_70 = arith.constant dense<0xFF800000> : vector<16xf32>
    %127 = vector.multi_reduction <maximumf>, %126, %cst_70 [1] : vector<16x16xf32> to vector<16xf32>
    %128 = vector.shape_cast %127 : vector<16xf32> to vector<16x1xf32>
    %129 = vector.broadcast %128 : vector<16x1xf32> to vector<16x16xf32>
    %130 = arith.subf %126, %129 : vector<16x16xf32>
    %131 = math.exp %130 : vector<16x16xf32>
    %cst_71 = arith.constant dense<0.000000e+00> : vector<16xf32>
    %132 = vector.multi_reduction <add>, %131, %cst_71 [1] : vector<16x16xf32> to vector<16xf32>
    %133 = vector.shape_cast %132 : vector<16xf32> to vector<16x1xf32>
    %134 = tpu.reciprocal %133 {approx = true} : vector<16x1xf32> -> vector<16x1xf32>
    %135 = vector.broadcast %134 : vector<16x1xf32> to vector<16x16xf32>
    %136 = arith.mulf %131, %135 : vector<16x16xf32>
    %c3_72 = arith.constant 3 : index
    %c0_73 = arith.constant 0 : index
    %c0_74 = arith.constant 0 : index
    %137 = vector.load %arg3[%c3_72, %c0_73, %c0_74] : memref<8x32x32xbf16, #tpu.memory_space<vmem>>, vector<1x32x32xbf16>
    %138 = vector.shape_cast %137 : vector<1x32x32xbf16> to vector<32x32xbf16>
    %cst_75 = arith.constant dense<0.000000e+00> : vector<16x32xf32>
    %139 = tpu.matmul %18, %138, %cst_75 {dimension_numbers = #tpu.dot_dimension_numbers<[1], [0], [0], [1], [0, 0, 1, 1], [], []>} : vector<16x32xbf16>, vector<32x32xbf16>, vector<16x32xf32> -> vector<16x32xf32>
    %140 = arith.truncf %136 : vector<16x16xf32> to vector<16x16xbf16>
    %141 = arith.truncf %139 : vector<16x32xf32> to vector<16x32xbf16>
    %cst_76 = arith.constant dense<0.000000e+00> : vector<16x32xf32>
    %142 = tpu.matmul %140, %141, %cst_76 {dimension_numbers = #tpu.dot_dimension_numbers<[1], [0], [0], [1], [0, 0, 1, 1], [], []>} : vector<16x16xbf16>, vector<16x32xbf16>, vector<16x32xf32> -> vector<16x32xf32>
    %143 = arith.addf %112, %142 : vector<16x32xf32>
    %144 = arith.addf %0, %143 : vector<16x32xf32>
    %c0_77 = arith.constant 0 : index
    %c0_78 = arith.constant 0 : index
    %145 = vector.load %arg7[%c0_77, %c0_78] : memref<8x64xf32, #tpu.memory_space<vmem>>, vector<1x32xf32>
    %146 = vector.broadcast %145 : vector<1x32xf32> to vector<16x32xf32>
    %147 = arith.addf %144, %146 : vector<16x32xf32>
    %cst_79 = arith.constant dense<0.000000e+00> : vector<16xf32>
    %148 = vector.multi_reduction <add>, %147, %cst_79 [1] : vector<16x32xf32> to vector<16xf32>
    %149 = vector.shape_cast %148 : vector<16xf32> to vector<16x1xf32>
    %cst_80 = arith.constant 3.200000e+01 : f32
    %150 = vector.broadcast %cst_80 : f32 to vector<16x1xf32>
    %151 = arith.divf %149, %150 : vector<16x1xf32>
    %152 = vector.broadcast %151 : vector<16x1xf32> to vector<16x32xf32>
    %153 = arith.subf %147, %152 : vector<16x32xf32>
    %154 = arith.mulf %153, %153 : vector<16x32xf32>
    %cst_81 = arith.constant dense<0.000000e+00> : vector<16xf32>
    %155 = vector.multi_reduction <add>, %154, %cst_81 [1] : vector<16x32xf32> to vector<16xf32>
    %156 = vector.shape_cast %155 : vector<16xf32> to vector<16x1xf32>
    %cst_82 = arith.constant 0.0322580636 : f32
    %157 = vector.broadcast %cst_82 : f32 to vector<16x1xf32>
    %158 = arith.mulf %156, %157 : vector<16x1xf32>
    %cst_83 = arith.constant 9.99999996E-13 : f32
    %159 = vector.broadcast %cst_83 : f32 to vector<16x1xf32>
    %160 = arith.addf %158, %159 : vector<16x1xf32>
    %161 = math.rsqrt %160 : vector<16x1xf32>
    %162 = vector.broadcast %161 : vector<16x1xf32> to vector<16x32xf32>
    %163 = arith.mulf %153, %162 : vector<16x32xf32>
    %164 = arith.truncf %163 : vector<16x32xf32> to vector<16x32xbf16>
    %c0_84 = arith.constant 0 : index
    %c0_85 = arith.constant 0 : index
    %c0_86 = arith.constant 0 : index
    %165 = vector.load %arg4[%c0_84, %c0_85, %c0_86] : memref<2x32x64xbf16, #tpu.memory_space<vmem>>, vector<1x32x64xbf16>
    %166 = vector.shape_cast %165 : vector<1x32x64xbf16> to vector<32x64xbf16>
    %cst_87 = arith.constant dense<0.000000e+00> : vector<16x64xf32>
    %167 = tpu.matmul %164, %166, %cst_87 {dimension_numbers = #tpu.dot_dimension_numbers<[1], [0], [0], [1], [0, 0, 1, 1], [], []>} : vector<16x32xbf16>, vector<32x64xbf16>, vector<16x64xf32> -> vector<16x64xf32>
    %c1_88 = arith.constant 1 : index
    %c0_89 = arith.constant 0 : index
    %168 = vector.load %arg7[%c1_88, %c0_89] : memref<8x64xf32, #tpu.memory_space<vmem>>, vector<1x64xf32>
    %169 = vector.broadcast %168 : vector<1x64xf32> to vector<16x64xf32>
    %170 = arith.addf %167, %169 : vector<16x64xf32>
    %cst_90 = arith.constant 0.000000e+00 : f32
    %171 = vector.broadcast %cst_90 : f32 to vector<16x64xf32>
    %172 = arith.maximumf %170, %171 : vector<16x64xf32>
    %173 = arith.truncf %172 : vector<16x64xf32> to vector<16x64xbf16>
    %c0_91 = arith.constant 0 : index
    %c0_92 = arith.constant 0 : index
    %c0_93 = arith.constant 0 : index
    %174 = vector.load %arg5[%c0_91, %c0_92, %c0_93] : memref<2x64x32xbf16, #tpu.memory_space<vmem>>, vector<1x64x32xbf16>
    %175 = vector.shape_cast %174 : vector<1x64x32xbf16> to vector<64x32xbf16>
    %cst_94 = arith.constant dense<0.000000e+00> : vector<16x32xf32>
    %176 = tpu.matmul %173, %175, %cst_94 {dimension_numbers = #tpu.dot_dimension_numbers<[1], [0], [0], [1], [0, 0, 1, 1], [], []>} : vector<16x64xbf16>, vector<64x32xbf16>, vector<16x32xf32> -> vector<16x32xf32>
    %177 = arith.addf %147, %176 : vector<16x32xf32>
    %c2_95 = arith.constant 2 : index
    %c0_96 = arith.constant 0 : index
    %178 = vector.load %arg7[%c2_95, %c0_96] : memref<8x64xf32, #tpu.memory_space<vmem>>, vector<1x32xf32>
    %179 = vector.broadcast %178 : vector<1x32xf32> to vector<16x32xf32>
    %180 = arith.addf %177, %179 : vector<16x32xf32>
    %cst_97 = arith.constant dense<0.000000e+00> : vector<16xf32>
    %181 = vector.multi_reduction <add>, %180, %cst_97 [1] : vector<16x32xf32> to vector<16xf32>
    %182 = vector.shape_cast %181 : vector<16xf32> to vector<16x1xf32>
    %cst_98 = arith.constant 3.200000e+01 : f32
    %183 = vector.broadcast %cst_98 : f32 to vector<16x1xf32>
    %184 = arith.divf %182, %183 : vector<16x1xf32>
    %185 = vector.broadcast %184 : vector<16x1xf32> to vector<16x32xf32>
    %186 = arith.subf %180, %185 : vector<16x32xf32>
    %187 = arith.mulf %186, %186 : vector<16x32xf32>
    %cst_99 = arith.constant dense<0.000000e+00> : vector<16xf32>
    %188 = vector.multi_reduction <add>, %187, %cst_99 [1] : vector<16x32xf32> to vector<16xf32>
    %189 = vector.shape_cast %188 : vector<16xf32> to vector<16x1xf32>
    %cst_100 = arith.constant 0.0322580636 : f32
    %190 = vector.broadcast %cst_100 : f32 to vector<16x1xf32>
    %191 = arith.mulf %189, %190 : vector<16x1xf32>
    %cst_101 = arith.constant 9.99999996E-13 : f32
    %192 = vector.broadcast %cst_101 : f32 to vector<16x1xf32>
    %193 = arith.addf %191, %192 : vector<16x1xf32>
    %194 = math.rsqrt %193 : vector<16x1xf32>
    %195 = vector.broadcast %194 : vector<16x1xf32> to vector<16x32xf32>
    %196 = arith.mulf %186, %195 : vector<16x32xf32>
    %197 = arith.truncf %196 : vector<16x32xf32> to vector<16x32xbf16>
    %cst_102 = arith.constant 0.000000e+00 : f32
    %198 = vector.broadcast %cst_102 : f32 to vector<16x32xf32>
    %c8 = arith.constant 8 : index
    %c0_103 = arith.constant 0 : index
    %c0_104 = arith.constant 0 : index
    %199 = vector.load %arg2[%c8, %c0_103, %c0_104] : memref<16x32x8xbf16, #tpu.memory_space<vmem>>, vector<1x32x8xbf16>
    %200 = vector.shape_cast %199 : vector<1x32x8xbf16> to vector<32x8xbf16>
    %cst_105 = arith.constant dense<0.000000e+00> : vector<16x8xf32>
    %201 = tpu.matmul %197, %200, %cst_105 {dimension_numbers = #tpu.dot_dimension_numbers<[1], [0], [0], [1], [0, 0, 1, 1], [], []>} : vector<16x32xbf16>, vector<32x8xbf16>, vector<16x8xf32> -> vector<16x8xf32>
    %c4_106 = arith.constant 4 : index
    %c0_107 = arith.constant 0 : index
    %c0_108 = arith.constant 0 : index
    %202 = vector.load %arg6[%c4_106, %c0_107, %c0_108] : memref<8x1x8xf32, #tpu.memory_space<vmem>>, vector<1x1x8xf32>
    %203 = vector.shape_cast %202 : vector<1x1x8xf32> to vector<1x8xf32>
    %204 = vector.broadcast %203 : vector<1x8xf32> to vector<16x8xf32>
    %205 = arith.addf %201, %204 : vector<16x8xf32>
    %c12 = arith.constant 12 : index
    %c0_109 = arith.constant 0 : index
    %c0_110 = arith.constant 0 : index
    %206 = vector.load %arg2[%c12, %c0_109, %c0_110] : memref<16x32x8xbf16, #tpu.memory_space<vmem>>, vector<1x32x8xbf16>
    %207 = vector.shape_cast %206 : vector<1x32x8xbf16> to vector<32x8xbf16>
    %cst_111 = arith.constant dense<0.000000e+00> : vector<16x8xf32>
    %208 = tpu.matmul %197, %207, %cst_111 {dimension_numbers = #tpu.dot_dimension_numbers<[1], [0], [0], [1], [0, 0, 1, 1], [], []>} : vector<16x32xbf16>, vector<32x8xbf16>, vector<16x8xf32> -> vector<16x8xf32>
    %209 = arith.truncf %205 : vector<16x8xf32> to vector<16x8xbf16>
    %210 = arith.truncf %208 : vector<16x8xf32> to vector<16x8xbf16>
    %cst_112 = arith.constant dense<0.000000e+00> : vector<16x16xf32>
    %211 = tpu.matmul %209, %210, %cst_112 {dimension_numbers = #tpu.dot_dimension_numbers<[1], [1], [0], [0], [0, 0, 1, 0], [], []>} : vector<16x8xbf16>, vector<16x8xbf16>, vector<16x16xf32> -> vector<16x16xf32>
    %212 = arith.addf %211, %1 : vector<16x16xf32>
    %cst_113 = arith.constant dense<0xFF800000> : vector<16xf32>
    %213 = vector.multi_reduction <maximumf>, %212, %cst_113 [1] : vector<16x16xf32> to vector<16xf32>
    %214 = vector.shape_cast %213 : vector<16xf32> to vector<16x1xf32>
    %215 = vector.broadcast %214 : vector<16x1xf32> to vector<16x16xf32>
    %216 = arith.subf %212, %215 : vector<16x16xf32>
    %217 = math.exp %216 : vector<16x16xf32>
    %cst_114 = arith.constant dense<0.000000e+00> : vector<16xf32>
    %218 = vector.multi_reduction <add>, %217, %cst_114 [1] : vector<16x16xf32> to vector<16xf32>
    %219 = vector.shape_cast %218 : vector<16xf32> to vector<16x1xf32>
    %220 = tpu.reciprocal %219 {approx = true} : vector<16x1xf32> -> vector<16x1xf32>
    %221 = vector.broadcast %220 : vector<16x1xf32> to vector<16x16xf32>
    %222 = arith.mulf %217, %221 : vector<16x16xf32>
    %c4_115 = arith.constant 4 : index
    %c0_116 = arith.constant 0 : index
    %c0_117 = arith.constant 0 : index
    %223 = vector.load %arg3[%c4_115, %c0_116, %c0_117] : memref<8x32x32xbf16, #tpu.memory_space<vmem>>, vector<1x32x32xbf16>
    %224 = vector.shape_cast %223 : vector<1x32x32xbf16> to vector<32x32xbf16>
    %cst_118 = arith.constant dense<0.000000e+00> : vector<16x32xf32>
    %225 = tpu.matmul %197, %224, %cst_118 {dimension_numbers = #tpu.dot_dimension_numbers<[1], [0], [0], [1], [0, 0, 1, 1], [], []>} : vector<16x32xbf16>, vector<32x32xbf16>, vector<16x32xf32> -> vector<16x32xf32>
    %226 = arith.truncf %222 : vector<16x16xf32> to vector<16x16xbf16>
    %227 = arith.truncf %225 : vector<16x32xf32> to vector<16x32xbf16>
    %cst_119 = arith.constant dense<0.000000e+00> : vector<16x32xf32>
    %228 = tpu.matmul %226, %227, %cst_119 {dimension_numbers = #tpu.dot_dimension_numbers<[1], [0], [0], [1], [0, 0, 1, 1], [], []>} : vector<16x16xbf16>, vector<16x32xbf16>, vector<16x32xf32> -> vector<16x32xf32>
    %229 = arith.addf %198, %228 : vector<16x32xf32>
    %c9 = arith.constant 9 : index
    %c0_120 = arith.constant 0 : index
    %c0_121 = arith.constant 0 : index
    %230 = vector.load %arg2[%c9, %c0_120, %c0_121] : memref<16x32x8xbf16, #tpu.memory_space<vmem>>, vector<1x32x8xbf16>
    %231 = vector.shape_cast %230 : vector<1x32x8xbf16> to vector<32x8xbf16>
    %cst_122 = arith.constant dense<0.000000e+00> : vector<16x8xf32>
    %232 = tpu.matmul %197, %231, %cst_122 {dimension_numbers = #tpu.dot_dimension_numbers<[1], [0], [0], [1], [0, 0, 1, 1], [], []>} : vector<16x32xbf16>, vector<32x8xbf16>, vector<16x8xf32> -> vector<16x8xf32>
    %c5_123 = arith.constant 5 : index
    %c0_124 = arith.constant 0 : index
    %c0_125 = arith.constant 0 : index
    %233 = vector.load %arg6[%c5_123, %c0_124, %c0_125] : memref<8x1x8xf32, #tpu.memory_space<vmem>>, vector<1x1x8xf32>
    %234 = vector.shape_cast %233 : vector<1x1x8xf32> to vector<1x8xf32>
    %235 = vector.broadcast %234 : vector<1x8xf32> to vector<16x8xf32>
    %236 = arith.addf %232, %235 : vector<16x8xf32>
    %c13 = arith.constant 13 : index
    %c0_126 = arith.constant 0 : index
    %c0_127 = arith.constant 0 : index
    %237 = vector.load %arg2[%c13, %c0_126, %c0_127] : memref<16x32x8xbf16, #tpu.memory_space<vmem>>, vector<1x32x8xbf16>
    %238 = vector.shape_cast %237 : vector<1x32x8xbf16> to vector<32x8xbf16>
    %cst_128 = arith.constant dense<0.000000e+00> : vector<16x8xf32>
    %239 = tpu.matmul %197, %238, %cst_128 {dimension_numbers = #tpu.dot_dimension_numbers<[1], [0], [0], [1], [0, 0, 1, 1], [], []>} : vector<16x32xbf16>, vector<32x8xbf16>, vector<16x8xf32> -> vector<16x8xf32>
    %240 = arith.truncf %236 : vector<16x8xf32> to vector<16x8xbf16>
    %241 = arith.truncf %239 : vector<16x8xf32> to vector<16x8xbf16>
    %cst_129 = arith.constant dense<0.000000e+00> : vector<16x16xf32>
    %242 = tpu.matmul %240, %241, %cst_129 {dimension_numbers = #tpu.dot_dimension_numbers<[1], [1], [0], [0], [0, 0, 1, 0], [], []>} : vector<16x8xbf16>, vector<16x8xbf16>, vector<16x16xf32> -> vector<16x16xf32>
    %243 = arith.addf %242, %1 : vector<16x16xf32>
    %cst_130 = arith.constant dense<0xFF800000> : vector<16xf32>
    %244 = vector.multi_reduction <maximumf>, %243, %cst_130 [1] : vector<16x16xf32> to vector<16xf32>
    %245 = vector.shape_cast %244 : vector<16xf32> to vector<16x1xf32>
    %246 = vector.broadcast %245 : vector<16x1xf32> to vector<16x16xf32>
    %247 = arith.subf %243, %246 : vector<16x16xf32>
    %248 = math.exp %247 : vector<16x16xf32>
    %cst_131 = arith.constant dense<0.000000e+00> : vector<16xf32>
    %249 = vector.multi_reduction <add>, %248, %cst_131 [1] : vector<16x16xf32> to vector<16xf32>
    %250 = vector.shape_cast %249 : vector<16xf32> to vector<16x1xf32>
    %251 = tpu.reciprocal %250 {approx = true} : vector<16x1xf32> -> vector<16x1xf32>
    %252 = vector.broadcast %251 : vector<16x1xf32> to vector<16x16xf32>
    %253 = arith.mulf %248, %252 : vector<16x16xf32>
    %c5_132 = arith.constant 5 : index
    %c0_133 = arith.constant 0 : index
    %c0_134 = arith.constant 0 : index
    %254 = vector.load %arg3[%c5_132, %c0_133, %c0_134] : memref<8x32x32xbf16, #tpu.memory_space<vmem>>, vector<1x32x32xbf16>
    %255 = vector.shape_cast %254 : vector<1x32x32xbf16> to vector<32x32xbf16>
    %cst_135 = arith.constant dense<0.000000e+00> : vector<16x32xf32>
    %256 = tpu.matmul %197, %255, %cst_135 {dimension_numbers = #tpu.dot_dimension_numbers<[1], [0], [0], [1], [0, 0, 1, 1], [], []>} : vector<16x32xbf16>, vector<32x32xbf16>, vector<16x32xf32> -> vector<16x32xf32>
    %257 = arith.truncf %253 : vector<16x16xf32> to vector<16x16xbf16>
    %258 = arith.truncf %256 : vector<16x32xf32> to vector<16x32xbf16>
    %cst_136 = arith.constant dense<0.000000e+00> : vector<16x32xf32>
    %259 = tpu.matmul %257, %258, %cst_136 {dimension_numbers = #tpu.dot_dimension_numbers<[1], [0], [0], [1], [0, 0, 1, 1], [], []>} : vector<16x16xbf16>, vector<16x32xbf16>, vector<16x32xf32> -> vector<16x32xf32>
    %260 = arith.addf %229, %259 : vector<16x32xf32>
    %c10 = arith.constant 10 : index
    %c0_137 = arith.constant 0 : index
    %c0_138 = arith.constant 0 : index
    %261 = vector.load %arg2[%c10, %c0_137, %c0_138] : memref<16x32x8xbf16, #tpu.memory_space<vmem>>, vector<1x32x8xbf16>
    %262 = vector.shape_cast %261 : vector<1x32x8xbf16> to vector<32x8xbf16>
    %cst_139 = arith.constant dense<0.000000e+00> : vector<16x8xf32>
    %263 = tpu.matmul %197, %262, %cst_139 {dimension_numbers = #tpu.dot_dimension_numbers<[1], [0], [0], [1], [0, 0, 1, 1], [], []>} : vector<16x32xbf16>, vector<32x8xbf16>, vector<16x8xf32> -> vector<16x8xf32>
    %c6_140 = arith.constant 6 : index
    %c0_141 = arith.constant 0 : index
    %c0_142 = arith.constant 0 : index
    %264 = vector.load %arg6[%c6_140, %c0_141, %c0_142] : memref<8x1x8xf32, #tpu.memory_space<vmem>>, vector<1x1x8xf32>
    %265 = vector.shape_cast %264 : vector<1x1x8xf32> to vector<1x8xf32>
    %266 = vector.broadcast %265 : vector<1x8xf32> to vector<16x8xf32>
    %267 = arith.addf %263, %266 : vector<16x8xf32>
    %c14 = arith.constant 14 : index
    %c0_143 = arith.constant 0 : index
    %c0_144 = arith.constant 0 : index
    %268 = vector.load %arg2[%c14, %c0_143, %c0_144] : memref<16x32x8xbf16, #tpu.memory_space<vmem>>, vector<1x32x8xbf16>
    %269 = vector.shape_cast %268 : vector<1x32x8xbf16> to vector<32x8xbf16>
    %cst_145 = arith.constant dense<0.000000e+00> : vector<16x8xf32>
    %270 = tpu.matmul %197, %269, %cst_145 {dimension_numbers = #tpu.dot_dimension_numbers<[1], [0], [0], [1], [0, 0, 1, 1], [], []>} : vector<16x32xbf16>, vector<32x8xbf16>, vector<16x8xf32> -> vector<16x8xf32>
    %271 = arith.truncf %267 : vector<16x8xf32> to vector<16x8xbf16>
    %272 = arith.truncf %270 : vector<16x8xf32> to vector<16x8xbf16>
    %cst_146 = arith.constant dense<0.000000e+00> : vector<16x16xf32>
    %273 = tpu.matmul %271, %272, %cst_146 {dimension_numbers = #tpu.dot_dimension_numbers<[1], [1], [0], [0], [0, 0, 1, 0], [], []>} : vector<16x8xbf16>, vector<16x8xbf16>, vector<16x16xf32> -> vector<16x16xf32>
    %274 = arith.addf %273, %1 : vector<16x16xf32>
    %cst_147 = arith.constant dense<0xFF800000> : vector<16xf32>
    %275 = vector.multi_reduction <maximumf>, %274, %cst_147 [1] : vector<16x16xf32> to vector<16xf32>
    %276 = vector.shape_cast %275 : vector<16xf32> to vector<16x1xf32>
    %277 = vector.broadcast %276 : vector<16x1xf32> to vector<16x16xf32>
    %278 = arith.subf %274, %277 : vector<16x16xf32>
    %279 = math.exp %278 : vector<16x16xf32>
    %cst_148 = arith.constant dense<0.000000e+00> : vector<16xf32>
    %280 = vector.multi_reduction <add>, %279, %cst_148 [1] : vector<16x16xf32> to vector<16xf32>
    %281 = vector.shape_cast %280 : vector<16xf32> to vector<16x1xf32>
    %282 = tpu.reciprocal %281 {approx = true} : vector<16x1xf32> -> vector<16x1xf32>
    %283 = vector.broadcast %282 : vector<16x1xf32> to vector<16x16xf32>
    %284 = arith.mulf %279, %283 : vector<16x16xf32>
    %c6_149 = arith.constant 6 : index
    %c0_150 = arith.constant 0 : index
    %c0_151 = arith.constant 0 : index
    %285 = vector.load %arg3[%c6_149, %c0_150, %c0_151] : memref<8x32x32xbf16, #tpu.memory_space<vmem>>, vector<1x32x32xbf16>
    %286 = vector.shape_cast %285 : vector<1x32x32xbf16> to vector<32x32xbf16>
    %cst_152 = arith.constant dense<0.000000e+00> : vector<16x32xf32>
    %287 = tpu.matmul %197, %286, %cst_152 {dimension_numbers = #tpu.dot_dimension_numbers<[1], [0], [0], [1], [0, 0, 1, 1], [], []>} : vector<16x32xbf16>, vector<32x32xbf16>, vector<16x32xf32> -> vector<16x32xf32>
    %288 = arith.truncf %284 : vector<16x16xf32> to vector<16x16xbf16>
    %289 = arith.truncf %287 : vector<16x32xf32> to vector<16x32xbf16>
    %cst_153 = arith.constant dense<0.000000e+00> : vector<16x32xf32>
    %290 = tpu.matmul %288, %289, %cst_153 {dimension_numbers = #tpu.dot_dimension_numbers<[1], [0], [0], [1], [0, 0, 1, 1], [], []>} : vector<16x16xbf16>, vector<16x32xbf16>, vector<16x32xf32> -> vector<16x32xf32>
    %291 = arith.addf %260, %290 : vector<16x32xf32>
    %c11 = arith.constant 11 : index
    %c0_154 = arith.constant 0 : index
    %c0_155 = arith.constant 0 : index
    %292 = vector.load %arg2[%c11, %c0_154, %c0_155] : memref<16x32x8xbf16, #tpu.memory_space<vmem>>, vector<1x32x8xbf16>
    %293 = vector.shape_cast %292 : vector<1x32x8xbf16> to vector<32x8xbf16>
    %cst_156 = arith.constant dense<0.000000e+00> : vector<16x8xf32>
    %294 = tpu.matmul %197, %293, %cst_156 {dimension_numbers = #tpu.dot_dimension_numbers<[1], [0], [0], [1], [0, 0, 1, 1], [], []>} : vector<16x32xbf16>, vector<32x8xbf16>, vector<16x8xf32> -> vector<16x8xf32>
    %c7_157 = arith.constant 7 : index
    %c0_158 = arith.constant 0 : index
    %c0_159 = arith.constant 0 : index
    %295 = vector.load %arg6[%c7_157, %c0_158, %c0_159] : memref<8x1x8xf32, #tpu.memory_space<vmem>>, vector<1x1x8xf32>
    %296 = vector.shape_cast %295 : vector<1x1x8xf32> to vector<1x8xf32>
    %297 = vector.broadcast %296 : vector<1x8xf32> to vector<16x8xf32>
    %298 = arith.addf %294, %297 : vector<16x8xf32>
    %c15 = arith.constant 15 : index
    %c0_160 = arith.constant 0 : index
    %c0_161 = arith.constant 0 : index
    %299 = vector.load %arg2[%c15, %c0_160, %c0_161] : memref<16x32x8xbf16, #tpu.memory_space<vmem>>, vector<1x32x8xbf16>
    %300 = vector.shape_cast %299 : vector<1x32x8xbf16> to vector<32x8xbf16>
    %cst_162 = arith.constant dense<0.000000e+00> : vector<16x8xf32>
    %301 = tpu.matmul %197, %300, %cst_162 {dimension_numbers = #tpu.dot_dimension_numbers<[1], [0], [0], [1], [0, 0, 1, 1], [], []>} : vector<16x32xbf16>, vector<32x8xbf16>, vector<16x8xf32> -> vector<16x8xf32>
    %302 = arith.truncf %298 : vector<16x8xf32> to vector<16x8xbf16>
    %303 = arith.truncf %301 : vector<16x8xf32> to vector<16x8xbf16>
    %cst_163 = arith.constant dense<0.000000e+00> : vector<16x16xf32>
    %304 = tpu.matmul %302, %303, %cst_163 {dimension_numbers = #tpu.dot_dimension_numbers<[1], [1], [0], [0], [0, 0, 1, 0], [], []>} : vector<16x8xbf16>, vector<16x8xbf16>, vector<16x16xf32> -> vector<16x16xf32>
    %305 = arith.addf %304, %1 : vector<16x16xf32>
    %cst_164 = arith.constant dense<0xFF800000> : vector<16xf32>
    %306 = vector.multi_reduction <maximumf>, %305, %cst_164 [1] : vector<16x16xf32> to vector<16xf32>
    %307 = vector.shape_cast %306 : vector<16xf32> to vector<16x1xf32>
    %308 = vector.broadcast %307 : vector<16x1xf32> to vector<16x16xf32>
    %309 = arith.subf %305, %308 : vector<16x16xf32>
    %310 = math.exp %309 : vector<16x16xf32>
    %cst_165 = arith.constant dense<0.000000e+00> : vector<16xf32>
    %311 = vector.multi_reduction <add>, %310, %cst_165 [1] : vector<16x16xf32> to vector<16xf32>
    %312 = vector.shape_cast %311 : vector<16xf32> to vector<16x1xf32>
    %313 = tpu.reciprocal %312 {approx = true} : vector<16x1xf32> -> vector<16x1xf32>
    %314 = vector.broadcast %313 : vector<16x1xf32> to vector<16x16xf32>
    %315 = arith.mulf %310, %314 : vector<16x16xf32>
    %c7_166 = arith.constant 7 : index
    %c0_167 = arith.constant 0 : index
    %c0_168 = arith.constant 0 : index
    %316 = vector.load %arg3[%c7_166, %c0_167, %c0_168] : memref<8x32x32xbf16, #tpu.memory_space<vmem>>, vector<1x32x32xbf16>
    %317 = vector.shape_cast %316 : vector<1x32x32xbf16> to vector<32x32xbf16>
    %cst_169 = arith.constant dense<0.000000e+00> : vector<16x32xf32>
    %318 = tpu.matmul %197, %317, %cst_169 {dimension_numbers = #tpu.dot_dimension_numbers<[1], [0], [0], [1], [0, 0, 1, 1], [], []>} : vector<16x32xbf16>, vector<32x32xbf16>, vector<16x32xf32> -> vector<16x32xf32>
    %319 = arith.truncf %315 : vector<16x16xf32> to vector<16x16xbf16>
    %320 = arith.truncf %318 : vector<16x32xf32> to vector<16x32xbf16>
    %cst_170 = arith.constant dense<0.000000e+00> : vector<16x32xf32>
    %321 = tpu.matmul %319, %320, %cst_170 {dimension_numbers = #tpu.dot_dimension_numbers<[1], [0], [0], [1], [0, 0, 1, 1], [], []>} : vector<16x16xbf16>, vector<16x32xbf16>, vector<16x32xf32> -> vector<16x32xf32>
    %322 = arith.addf %291, %321 : vector<16x32xf32>
    %323 = arith.addf %180, %322 : vector<16x32xf32>
    %c3_171 = arith.constant 3 : index
    %c0_172 = arith.constant 0 : index
    %324 = vector.load %arg7[%c3_171, %c0_172] : memref<8x64xf32, #tpu.memory_space<vmem>>, vector<1x32xf32>
    %325 = vector.broadcast %324 : vector<1x32xf32> to vector<16x32xf32>
    %326 = arith.addf %323, %325 : vector<16x32xf32>
    %cst_173 = arith.constant dense<0.000000e+00> : vector<16xf32>
    %327 = vector.multi_reduction <add>, %326, %cst_173 [1] : vector<16x32xf32> to vector<16xf32>
    %328 = vector.shape_cast %327 : vector<16xf32> to vector<16x1xf32>
    %cst_174 = arith.constant 3.200000e+01 : f32
    %329 = vector.broadcast %cst_174 : f32 to vector<16x1xf32>
    %330 = arith.divf %328, %329 : vector<16x1xf32>
    %331 = vector.broadcast %330 : vector<16x1xf32> to vector<16x32xf32>
    %332 = arith.subf %326, %331 : vector<16x32xf32>
    %333 = arith.mulf %332, %332 : vector<16x32xf32>
    %cst_175 = arith.constant dense<0.000000e+00> : vector<16xf32>
    %334 = vector.multi_reduction <add>, %333, %cst_175 [1] : vector<16x32xf32> to vector<16xf32>
    %335 = vector.shape_cast %334 : vector<16xf32> to vector<16x1xf32>
    %cst_176 = arith.constant 0.0322580636 : f32
    %336 = vector.broadcast %cst_176 : f32 to vector<16x1xf32>
    %337 = arith.mulf %335, %336 : vector<16x1xf32>
    %cst_177 = arith.constant 9.99999996E-13 : f32
    %338 = vector.broadcast %cst_177 : f32 to vector<16x1xf32>
    %339 = arith.addf %337, %338 : vector<16x1xf32>
    %340 = math.rsqrt %339 : vector<16x1xf32>
    %341 = vector.broadcast %340 : vector<16x1xf32> to vector<16x32xf32>
    %342 = arith.mulf %332, %341 : vector<16x32xf32>
    %343 = arith.truncf %342 : vector<16x32xf32> to vector<16x32xbf16>
    %c1_178 = arith.constant 1 : index
    %c0_179 = arith.constant 0 : index
    %c0_180 = arith.constant 0 : index
    %344 = vector.load %arg4[%c1_178, %c0_179, %c0_180] : memref<2x32x64xbf16, #tpu.memory_space<vmem>>, vector<1x32x64xbf16>
    %345 = vector.shape_cast %344 : vector<1x32x64xbf16> to vector<32x64xbf16>
    %cst_181 = arith.constant dense<0.000000e+00> : vector<16x64xf32>
    %346 = tpu.matmul %343, %345, %cst_181 {dimension_numbers = #tpu.dot_dimension_numbers<[1], [0], [0], [1], [0, 0, 1, 1], [], []>} : vector<16x32xbf16>, vector<32x64xbf16>, vector<16x64xf32> -> vector<16x64xf32>
    %c4_182 = arith.constant 4 : index
    %c0_183 = arith.constant 0 : index
    %347 = vector.load %arg7[%c4_182, %c0_183] : memref<8x64xf32, #tpu.memory_space<vmem>>, vector<1x64xf32>
    %348 = vector.broadcast %347 : vector<1x64xf32> to vector<16x64xf32>
    %349 = arith.addf %346, %348 : vector<16x64xf32>
    %cst_184 = arith.constant 0.000000e+00 : f32
    %350 = vector.broadcast %cst_184 : f32 to vector<16x64xf32>
    %351 = arith.maximumf %349, %350 : vector<16x64xf32>
    %352 = arith.truncf %351 : vector<16x64xf32> to vector<16x64xbf16>
    %c1_185 = arith.constant 1 : index
    %c0_186 = arith.constant 0 : index
    %c0_187 = arith.constant 0 : index
    %353 = vector.load %arg5[%c1_185, %c0_186, %c0_187] : memref<2x64x32xbf16, #tpu.memory_space<vmem>>, vector<1x64x32xbf16>
    %354 = vector.shape_cast %353 : vector<1x64x32xbf16> to vector<64x32xbf16>
    %cst_188 = arith.constant dense<0.000000e+00> : vector<16x32xf32>
    %355 = tpu.matmul %352, %354, %cst_188 {dimension_numbers = #tpu.dot_dimension_numbers<[1], [0], [0], [1], [0, 0, 1, 1], [], []>} : vector<16x64xbf16>, vector<64x32xbf16>, vector<16x32xf32> -> vector<16x32xf32>
    %356 = arith.addf %326, %355 : vector<16x32xf32>
    %c5_189 = arith.constant 5 : index
    %c0_190 = arith.constant 0 : index
    %357 = vector.load %arg7[%c5_189, %c0_190] : memref<8x64xf32, #tpu.memory_space<vmem>>, vector<1x32xf32>
    %358 = vector.broadcast %357 : vector<1x32xf32> to vector<16x32xf32>
    %359 = arith.addf %356, %358 : vector<16x32xf32>
    %c6_191 = arith.constant 6 : index
    %c0_192 = arith.constant 0 : index
    %360 = vector.load %arg7[%c6_191, %c0_192] : memref<8x64xf32, #tpu.memory_space<vmem>>, vector<1x32xf32>
    %c7_193 = arith.constant 7 : index
    %c0_194 = arith.constant 0 : index
    %361 = vector.load %arg7[%c7_193, %c0_194] : memref<8x64xf32, #tpu.memory_space<vmem>>, vector<1x32xf32>
    %cst_195 = arith.constant dense<0.000000e+00> : vector<16xf32>
    %362 = vector.multi_reduction <add>, %359, %cst_195 [1] : vector<16x32xf32> to vector<16xf32>
    %363 = vector.shape_cast %362 : vector<16xf32> to vector<16x1xf32>
    %cst_196 = arith.constant 3.200000e+01 : f32
    %364 = vector.broadcast %cst_196 : f32 to vector<16x1xf32>
    %365 = arith.divf %363, %364 : vector<16x1xf32>
    %366 = vector.broadcast %365 : vector<16x1xf32> to vector<16x32xf32>
    %367 = arith.subf %359, %366 : vector<16x32xf32>
    %368 = arith.mulf %367, %367 : vector<16x32xf32>
    %cst_197 = arith.constant dense<0.000000e+00> : vector<16xf32>
    %369 = vector.multi_reduction <add>, %368, %cst_197 [1] : vector<16x32xf32> to vector<16xf32>
    %370 = vector.shape_cast %369 : vector<16xf32> to vector<16x1xf32>
    %cst_198 = arith.constant 0.0322580636 : f32
    %371 = vector.broadcast %cst_198 : f32 to vector<16x1xf32>
    %372 = arith.mulf %370, %371 : vector<16x1xf32>
    %cst_199 = arith.constant 9.99999996E-13 : f32
    %373 = vector.broadcast %cst_199 : f32 to vector<16x1xf32>
    %374 = arith.addf %372, %373 : vector<16x1xf32>
    %375 = math.rsqrt %374 : vector<16x1xf32>
    %376 = vector.broadcast %375 : vector<16x1xf32> to vector<16x32xf32>
    %377 = arith.mulf %367, %376 : vector<16x32xf32>
    %378 = vector.broadcast %360 : vector<1x32xf32> to vector<16x32xf32>
    %379 = arith.mulf %378, %377 : vector<16x32xf32>
    %380 = vector.broadcast %361 : vector<1x32xf32> to vector<16x32xf32>
    %381 = arith.addf %379, %380 : vector<16x32xf32>
    %c0_200 = arith.constant 0 : index
    %c0_201 = arith.constant 0 : index
    %382 = vector.load %arg8[%c0_200, %c0_201] : memref<16x32xf32, #tpu.memory_space<vmem>>, vector<16x32xf32>
    tpu.vector_store %arg8[%c0_200, %c0_201], %381 {strides = array<i32>} : memref<16x32xf32, #tpu.memory_space<vmem>>, vector<16x32xf32>,
    return
  }
}

</mosaic_0001>

<bundles_post_ra>
// kernel: encoder_forward.1
= control target key start
LH: loop header
LB: loop body
LE: loop exit
PB: predicated region body
PF: predicated region fallthrough
CT: control target
= control target key end

     0   :  { %vm35_vm0 = vcmask 261120   ;;  %s4478_s0 = inlined_call_operand.vmem [shape: f32[16,32], index: 0, kind: input, shape index: {}]   ;;  %s4479_s1 = inlined_call_operand.vmem [shape: f32[16,16], index: 1, kind: input, shape index: {}]   ;;  %s4480_s2 = inlined_call_operand.vmem [shape: bf16[16,32,8], index: 2, kind: input, shape index: {}]   ;;  %s4481_s3 = inlined_call_operand.vmem [shape: bf16[8,32,32], index: 3, kind: input, shape index: {}]   ;;  %s4482_s4 = inlined_call_operand.vmem [shape: bf16[2,32,64], index: 4, kind: input, shape index: {}]   ;;  %s4483_s5 = inlined_call_operand.vmem [shape: bf16[2,64,32], index: 5, kind: input, shape index: {}]   ;;  %s4484_s6 = inlined_call_operand.vmem [shape: f32[8,1,8], index: 6, kind: input, shape index: {}]   ;;  %s4485_s7 = inlined_call_operand.vmem [shape: f32[8,64], index: 7, kind: input, shape index: {}]   ;;  %s4486_s8 = inlined_call_operand.hbm [shape: f32[16,32], index: 8, kind: output, shape index: {}]  }
   0x1   :  { %v31_v0 = vld [vmem:[%s4478_s0] sm:$0xff]  ;;  %v32_v1 = vld [vmem:[%s4478_s0 + $0x8] sm:$0xff] }
   0x2   :  { %v36_v2 = vsel %vm35_vm0, %v31_v0, 0.0  ;;  %v39_v3 = vsel %vm35_vm0, %v32_v1, 0.0 }
   0x3   :  { %37 = vadd.xlane.f32.xlu0 %v36_v2 }
   0x7   :  { %40 = vadd.xlane.f32.xlu0 %v39_v3 }
   0x8   :  { %13 = vsyncpa [#allocation3], 0  ;;  %v3615_v14 = vld [vmem:[%s4480_s2] sm:$0xff]   ;;  %v3787_v15 = vmov 0.0   ;;  %v3616_v16 = vld [vmem:[%s4480_s2 + $0x8] sm:$0xff]   ;;  %vm3788_vm1 = vmmov 0  }
   0x9   :  { %3282 = vmatprep.subr.bf16.mxu1 %v3787_v15  ;;  %3298 = vmatprep.subr.bf16.mxu0 %v3787_v15  ;;  %v3617_v27 = vld [vmem:[%s4480_s2 + $0x40] sm:$0xff]   ;;  %v3618_v29 = vld [vmem:[%s4480_s2 + $0x48] sm:$0xff]   ;;  %v3621_v32 = vld [vmem:[%s4480_s2 + $0x50] sm:$0xff]   ;;  %vm191_vm2 = vcmask 64512   ;;  %vm239_vm3 = vcmask 130048   ;;  %vm1402_vm4 = vcmask 523264  }
   0xa   :  { %3283 = vmatpush3.bf16.msra.mxu1 %v3615_v14  ;;  %3286 = vmatprep.mubr.msk.bf16.mxu1 %vm3788_vm1, %v3787_v15  ;;  %v3619_v30 = vld [vmem:[%s4481_s3] sm:$0xff]   ;;  %v3620_v31 = vld [vmem:[%s4481_s3 + $0x8] sm:$0xff]   ;;  %v3622_v33 = vld [vmem:[%s4480_s2 + $0x58] sm:$0xff]   ;;  %s3789_s29 = smov [#allocation2]  }
   0xb   :  { %3284 = vmatprep.subr.bf16.mxu1 %v3787_v15  ;;  %3300 = vmatprep.mubr.msk.bf16.mxu0 %vm3788_vm1, %v3787_v15  ;;  %v3623_v34 = vld [vmem:[%s4481_s3 + $0x10] sm:$0xff]   ;;  %v3624_v35 = vld [vmem:[%s4481_s3 + $0x18] sm:$0xff]   ;;  %v2935_v36 = vld [vmem:[%s4484_s6] ss:$0 sm:$0xff]  ;;  %s2924_s30 = sshll.u32 %s3789_s29, 4  ;;  %s2925_s30 = int_to_ptr.vmem [resolvable:$true] %s2924_s30 }
   0xc   :  { %v3625_v53 = vld [vmem:[%s4480_s2 + $0x10] sm:$0xff]   ;;  %v3626_v56 = vld [vmem:[%s4480_s2 + $0x18] sm:$0xff]   ;;  %v2955_v14 = vld [vmem:[%s4484_s6 + $0x1] ss:$0 sm:$0xff]  ;;  %p3768_p1 = scmp.lt.s32.totalorder %s2925_s30, %s2925_s30 }
   0xe   :  { %3285 = vmatpush3.bf16.msra.mxu1 %v3616_v16 }
   0xf   :  { %3290 = vmatprep.subr.bf16.mxu1 %v3787_v15 }
  0x90   :  { %v38_v4 = vpop.xlane.xlu0 %37 }
  0x91   :  { %v43_v5 = vmul.f32 0.03125, %v38_v4  ;;  %v3941_v4 = vld [vmem:[%s4479_s1] sm:$0xff] }
  0x93   :  { %v45_v6 = vsub.f32 %v31_v0, %v43_v5 }
  0x94   :  { %v41_v7 = vpop.xlane.xlu0 %40 }
  0x95   :  { %v44_v8 = vmul.f32 0.03125, %v41_v7  ;;  %v47_v9 = vmul.f32 %v45_v6, %v45_v6 }
  0x97   :  { %v46_v10 = vsub.f32 %v32_v1, %v44_v8  ;;  %v49_v11 = vsel %vm35_vm0, %v47_v9, 0.0 }
  0x98   :  { %50 = vadd.xlane.f32.xlu1 %v49_v11 }
  0x99   :  { %v48_v12 = vmul.f32 %v46_v10, %v46_v10 }
  0x9b   :  { %v52_v13 = vsel %vm35_vm0, %v48_v12, 0.0 }
  0x9c   :  { %53 = vadd.xlane.f32.xlu1 %v52_v13 }
 0x125   :  { %v51_v17 = vpop.xlane.xlu1 %50 }
 0x126   :  { %v55_v18 = vmul.f32 0.032258064, %v51_v17 }
 0x128   :  { %v57_v19 = vadd.f32 1e-12, %v55_v18 }
 0x129   :  { %v54_v20 = vpop.xlane.xlu1 %53 }
 0x12a   :  { %v56_v21 = vmul.f32 0.032258064, %v54_v20  ;;  %3675 = vrsqrt.f32 %v57_v19 }
 0x12c   :  { %v58_v22 = vadd.f32 1e-12, %v56_v21 }
 0x12e   :  { %3677 = vrsqrt.f32 %v58_v22 }
 0x134   :  { %v3676_v23 = vpop.eup %3675 }
 0x135   :  { %v61_v25 = vmul.f32 %v3676_v23, %v45_v6  ;;  %v3946_v6 = vld [vmem:[%s4479_s1 + $0x8] sm:$0xff] }
 0x138   :  { %v3678_v24 = vpop.eup %3677 }
 0x139   :  { %v62_v26 = vmul.f32 %v3678_v24, %v46_v10 }
 0x13b   :  { %v3864_v28 = vpack.c.bf16 %v62_v26, %v61_v25 }
 0x13d   :  { %3287 = vmatmul.mubr.msk.bf16.vlgmr.msra.gmra.mrb[0].mxu1 %vm35_vm0, %v3864_v28 }
 0x13e   :  { %3291 = vmatpush3.bf16.msra.mxu1 %v3617_v27  ;;  %3294 = vmatprep.mubr.msk.bf16.mxu1 %vm3788_vm1, %v3787_v15 }
 0x13f   :  { %3292 = vmatprep.subr.bf16.mxu1 %v3787_v15 }
 0x142   :  { %3293 = vmatpush3.bf16.msra.mxu1 %v3618_v29 }
 0x143   :  { %3304 = vmatprep.subr.bf16.mxu1 %v3787_v15 }
 0x145   :  { %3295 = vmatmul.mubr.msk.bf16.vlgmr.msra.gmra.mrb[4].mxu1 %vm35_vm0, %v3864_v28 }
 0x146   :  { %3305 = vmatpush3.bf16.msra.mxu1 %v3619_v30  ;;  %3308 = vmatprep.mubr.msk.bf16.mxu1 %vm3788_vm1, %v3787_v15 }
 0x147   :  { %3306 = vmatprep.subr.bf16.mxu1 %v3787_v15 }
 0x14a   :  { %3307 = vmatpush3.bf16.msra.mxu1 %v3620_v31 }
 0x14b   :  { %3320 = vmatprep.subr.bf16.mxu1 %v3787_v15 }
 0x14d   :  { %3309 = vmatmul.mubr.msk.bf16.vlgmr.msra.gmra.mrb[8].mxu1 %vm35_vm0, %v3864_v28 }
 0x14e   :  { %3321 = vmatpush3.bf16.msra.mxu1 %v3621_v32  ;;  %3324 = vmatprep.mubr.msk.bf16.mxu1 %vm3788_vm1, %v3787_v15 }
 0x14f   :  { %3322 = vmatprep.subr.bf16.mxu1 %v3787_v15 }
 0x152   :  { %3323 = vmatpush3.bf16.msra.mxu1 %v3622_v33 }
 0x153   :  { %3334 = vmatprep.subr.bf16.mxu1 %v3787_v15 }
 0x155   :  { %3325 = vmatmul.mubr.msk.bf16.vlgmr.msra.gmra.mrb[12].mxu1 %vm35_vm0, %v3864_v28 }
 0x156   :  { %3335 = vmatpush3.bf16.msra.mxu1 %v3623_v34  ;;  %3338 = vmatprep.mubr.msk.bf16.mxu1 %vm3788_vm1, %v3787_v15 }
 0x157   :  { %3336 = vmatprep.subr.bf16.mxu1 %v3787_v15 }
 0x15a   :  { %3337 = vmatpush3.bf16.msra.mxu1 %v3624_v35 }
 0x15b   :  { %3348 = vmatprep.subr.bf16.mxu1 %v3787_v15 }
 0x15d   :  { %3339 = vmatmul.mubr.msk.bf16.vlgmr.msra.gmra.mrb[16].mxu1 %vm35_vm0, %v3864_v28 }
 0x15e   :  { %3350 = vmatprep.mubr.msk.bf16.mxu1 %vm3788_vm1, %v3787_v15 }
 0x210   :  { %v124_v37 = vpop.f32.mrb[0].mxu1 }
 0x211   :  { %v3288_v38 = vpop.f32.mrb[1].mxu1  ;;  %v125_v40 = vadd.f32 %v2935_v36, %v124_v37 }
 0x212   :  { %v127_v39 = vpop.f32.mrb[2].mxu1 }
 0x213   :  { %v128_v41 = vadd.f32 %v2935_v36, %v127_v39  ;;  %v3289_v42 = vpop.f32.mrb[3].mxu1 }
 0x215   :  { %v189_v43 = vpack.c.bf16 %v128_v41, %v125_v40 }
 0x218   :  { %v182_v44 = vpop.f32.mrb[4].mxu1 }
 0x219   :  { %v3296_v45 = vpop.f32.mrb[5].mxu1 }
 0x21a   :  { %v185_v46 = vpop.f32.mrb[6].mxu1 }
 0x21b   :  { %v190_v47 = vpack.c.bf16 %v185_v46, %v182_v44  ;;  %v3297_v48 = vpop.f32.mrb[7].mxu1 }
 0x21d   :  { %v196_v49 = vsel %vm191_vm2, %v190_v47, 0 }
 0x21e   :  { %3299 = vmatpush3.bf16.xpose.msra.mxu0 %v196_v49 }
 0x21f   :  { %3312 = vmatprep.subr.bf16.mxu0 %v3787_v15 }
 0x220   :  { %v312_v50 = vpop.f32.mrb[8].mxu1 }
 0x221   :  { %v3310_v51 = vpop.f32.mrb[9].mxu1 }
 0x222   :  { %v315_v52 = vpop.f32.mrb[10].mxu1 }
 0x223   :  { %v320_v54 = vpack.c.bf16 %v315_v52, %v312_v50  ;;  %v3311_v55 = vpop.f32.mrb[11].mxu1 }
 0x225   :  { %3301 = vmatmul.mubr.msk.bf16.vlgmr.msra.gmra.mrb[0].mxu0 %vm191_vm2, %v189_v43  ;;  %3349 = vmatpush3.bf16.msra.mxu1 %v320_v54 }
 0x226   :  { %3313 = vmatpush3.bf16.msra.mxu0 %v3625_v53  ;;  %3316 = vmatprep.mubr.msk.bf16.mxu0 %vm3788_vm1, %v3787_v15 }
 0x227   :  { %3314 = vmatprep.subr.bf16.mxu0 %v3787_v15  ;;  %3362 = vmatprep.subr.bf16.mxu1 %v3787_v15 }
 0x228   :  { %v438_v57 = vpop.f32.mrb[12].mxu1 }
 0x229   :  { %v3326_v58 = vpop.f32.mrb[13].mxu1 }
 0x22a   :  { %3315 = vmatpush3.bf16.msra.mxu0 %v3626_v56  ;;  %v441_v59 = vpop.f32.mrb[14].mxu1  ;;  %v3627_v58 = vld [vmem:[%s4480_s2 + $0x60] sm:$0xff]  }
 0x22b   :  { %v446_v60 = vpack.c.bf16 %v441_v59, %v438_v57  ;;  %v3327_v61 = vpop.f32.mrb[15].mxu1  ;;  %3328 = vmatprep.subr.bf16.mxu0 %v3787_v15 }
 0x22c   :  { %v3629_v61 = vld [vmem:[%s4481_s3 + $0x20] sm:$0xff]  }
 0x22d   :  { %3317 = vmatmul.mubr.msk.bf16.vlgmr.msra.gmra.mrb[4].mxu0 %vm35_vm0, %v3864_v28  ;;  %v451_v0 = vsel %vm191_vm2, %v446_v60, 0  ;;  %v3628_v60 = vld [vmem:[%s4480_s2 + $0x68] sm:$0xff]  }
 0x22e   :  { %3330 = vmatprep.mubr.msk.bf16.mxu0 %vm3788_vm1, %v3787_v15 }
 0x230   :  { %v567_v62 = vpop.f32.mrb[16].mxu1 }
 0x231   :  { %v3340_v63 = vpop.f32.mrb[17].mxu1 }
 0x232   :  { %v570_v1 = vpop.f32.mrb[18].mxu1  ;;  %v3631_v63 = vld [vmem:[%s4480_s2 + $0x30] sm:$0xff]  }
 0x233   :  { %v575_v2 = vpack.c.bf16 %v570_v1, %v567_v62  ;;  %3329 = vmatpush3.bf16.xpose.msra.mxu0 %v451_v0  ;;  %v3341_v3 = vpop.f32.mrb[19].mxu1  ;;  %v3630_v62 = vld [vmem:[%s4481_s3 + $0x28] sm:$0xff]   ;;  %v3632_v0 = vld [vmem:[%s4480_s2 + $0x38] sm:$0xff]  }
 0x234   :  { %3342 = vmatprep.subr.bf16.mxu0 %v3787_v15 }
 0x2f8   :  { %v232_v5 = vpop.f32.mrb[0].mxu0 }
 0x2f9   :  { %v233_v7 = vadd.f32 %v232_v5, %v3941_v4  ;;  %v3302_v8 = vpop.f32.mrb[1].mxu0 }
 0x2fa   :  { %v235_v9 = vpop.f32.mrb[2].mxu0 }
 0x2fb   :  { %v236_v10 = vadd.f32 %v235_v9, %v3946_v6  ;;  %v3303_v11 = vpop.f32.mrb[3].mxu0  ;;  %v240_v12 = vsel %vm239_vm3, %v233_v7, -inf  ;;  %v3633_v9 = vld [vmem:[%s4480_s2 + $0x20] sm:$0xff]  }
 0x2fc   :  { %241 = vmax.xlane.f32.xlu0 %v240_v12  ;;  %v3634_v11 = vld [vmem:[%s4480_s2 + $0x28] sm:$0xff]  }
 0x2fd   :  { %v243_v13 = vsel %vm239_vm3, %v236_v10, -inf }
 0x2fe   :  { %244 = vmax.xlane.f32.xlu1 %v243_v13 }
 0x300   :  { %v380_v16 = vpop.f32.mrb[4].mxu0 }
 0x301   :  { %v3318_v17 = vpop.f32.mrb[5].mxu0  ;;  %v381_v19 = vadd.f32 %v2955_v14, %v380_v16 }
 0x302   :  { %v383_v18 = vpop.f32.mrb[6].mxu0 }
 0x303   :  { %v384_v20 = vadd.f32 %v2955_v14, %v383_v18  ;;  %v3319_v21 = vpop.f32.mrb[7].mxu0 }
 0x305   :  { %v445_v22 = vpack.c.bf16 %v384_v20, %v381_v19 }
 0x307   :  { %3331 = vmatmul.mubr.msk.bf16.vlgmr.msra.gmra.mrb[8].mxu0 %vm191_vm2, %v445_v22 }
 0x308   :  { %3343 = vmatpush3.bf16.msra.mxu0 %v575_v2  ;;  %3344 = vmatprep.mubr.msk.bf16.mxu0 %vm3788_vm1, %v3787_v15 }
 0x309   :  { %3354 = vmatprep.subr.bf16.mxu0 %v3787_v15 }
 0x389   :  { %v242_v23 = vpop.xlane.xlu0 %241 }
 0x38a   :  { %v246_v25 = vsub.f32 %v233_v7, %v242_v23 }
 0x38b   :  { %v245_v24 = vpop.xlane.xlu1 %244 }
 0x38c   :  { %v247_v26 = vsub.f32 %v236_v10, %v245_v24  ;;  %v248_v27 = vmul.f32 1.442695, %v246_v25 }
 0x38e   :  { %v250_v29 = vmul.f32 1.442695, %v247_v26  ;;  %3679 = vpow2.f32 %v248_v27 }
 0x390   :  { %3681 = vpow2.f32 %v250_v29  ;;  %v3006_v29 = vld [vmem:[%s4484_s6 + $0x3] ss:$0 sm:$0xff] }
 0x398   :  { %v3680_v37 = vpop.eup %3679 }
 0x399   :  { %v252_v40 = vsel %vm239_vm3, %v3680_v37, 0.0 }
 0x39a   :  { %v3682_v39 = vpop.eup %3681 }
 0x39b   :  { %v255_v41 = vsel %vm239_vm3, %v3682_v39, 0.0 }
 0x3da   :  { %v487_v30 = vpop.f32.mrb[8].mxu0 }
 0x3db   :  { %v488_v31 = vadd.f32 %v487_v30, %v3941_v4  ;;  %v3332_v32 = vpop.f32.mrb[9].mxu0 }
 0x3dc   :  { %v490_v33 = vpop.f32.mrb[10].mxu0 }
 0x3dd   :  { %v491_v34 = vadd.f32 %v490_v33, %v3946_v6  ;;  %v3333_v35 = vpop.f32.mrb[11].mxu0  ;;  %v494_v36 = vsel %vm239_vm3, %v488_v31, -inf }
 0x3de   :  { %495 = vmax.xlane.f32.xlu0 %v494_v36 }
 0x3df   :  { %v497_v38 = vsel %vm239_vm3, %v491_v34, -inf }
 0x3e0   :  { %498 = vmax.xlane.f32.xlu1 %v497_v38 }
 0x3e2   :  { %253 = vadd.xlane.f32.xlu0 %v252_v40 }
 0x3e4   :  { %256 = vadd.xlane.f32.xlu1 %v255_v41 }
 0x46b   :  { %v496_v42 = vpop.xlane.xlu0 %495 }
 0x46c   :  { %v500_v43 = vsub.f32 %v488_v31, %v496_v42 }
 0x46d   :  { %v499_v44 = vpop.xlane.xlu1 %498 }
 0x46e   :  { %v502_v45 = vmul.f32 1.442695, %v500_v43  ;;  %v501_v46 = vsub.f32 %v491_v34, %v499_v44  ;;  %v2981_v43 = vld [vmem:[%s4484_s6 + $0x2] ss:$0 sm:$0xff] }
 0x46f   :  { %v254_v47 = vpop.xlane.xlu0 %253 }
 0x470   :  { %3683 = vpow2.f32 %v502_v45  ;;  %v504_v48 = vmul.f32 1.442695, %v501_v46 }
 0x471   :  { %3685 = vrcp.f32 %v254_v47  ;;  %v257_v49 = vpop.xlane.xlu1 %256 }
 0x472   :  { %3687 = vpow2.f32 %v504_v48 }
 0x473   :  { %3689 = vrcp.f32 %v257_v49 }
 0x47a   :  { %v3684_v50 = vpop.eup %3683 }
 0x47b   :  { %v3686_v51 = vpop.eup %3685  ;;  %v506_v52 = vsel %vm239_vm3, %v3684_v50, 0.0 }
 0x47c   :  { %v3688_v53 = vpop.eup %3687  ;;  %507 = vadd.xlane.f32.xlu0 %v506_v52  ;;  %v260_v56 = vmul.f32 %v3686_v51, %v3680_v37 }
 0x47d   :  { %v3690_v54 = vpop.eup %3689  ;;  %v509_v55 = vsel %vm239_vm3, %v3688_v53, 0.0 }
 0x47e   :  { %v261_v57 = vmul.f32 %v3690_v54, %v3682_v39  ;;  %510 = vadd.xlane.f32.xlu1 %v509_v55 }
 0x480   :  { %v319_v59 = vpack.c.bf16 %v261_v57, %v260_v56 }
 0x482   :  { %3351 = vmatmul.mubr.msk.bf16.vlgmr.msra.gmra.mrb[20].mxu1 %vm239_vm3, %v319_v59 }
 0x483   :  { %3363 = vmatpush3.bf16.msra.mxu1 %v3627_v58  ;;  %3366 = vmatprep.mubr.msk.bf16.mxu1 %vm3788_vm1, %v3787_v15 }
 0x484   :  { %3364 = vmatprep.subr.bf16.mxu1 %v3787_v15 }
 0x487   :  { %3365 = vmatpush3.bf16.msra.mxu1 %v3628_v60 }
 0x488   :  { %3376 = vmatprep.subr.bf16.mxu1 %v3787_v15 }
 0x48a   :  { %3367 = vmatmul.mubr.msk.bf16.vlgmr.msra.gmra.mrb[24].mxu1 %vm35_vm0, %v3864_v28 }
 0x48b   :  { %3377 = vmatpush3.bf16.msra.mxu1 %v3629_v61  ;;  %3380 = vmatprep.mubr.msk.bf16.mxu1 %vm3788_vm1, %v3787_v15 }
 0x48c   :  { %3378 = vmatprep.subr.bf16.mxu1 %v3787_v15 }
 0x48f   :  { %3379 = vmatpush3.bf16.msra.mxu1 %v3630_v62 }
 0x490   :  { %3390 = vmatprep.subr.bf16.mxu1 %v3787_v15 }
 0x492   :  { %3381 = vmatmul.mubr.msk.bf16.vlgmr.msra.gmra.mrb[28].mxu1 %vm35_vm0, %v3864_v28 }
 0x493   :  { %3391 = vmatpush3.bf16.msra.mxu1 %v3631_v63  ;;  %3394 = vmatprep.mubr.msk.bf16.mxu1 %vm3788_vm1, %v3787_v15 }
 0x494   :  { %3392 = vmatprep.subr.bf16.mxu1 %v3787_v15 }
 0x497   :  { %3393 = vmatpush3.bf16.msra.mxu1 %v3632_v0 }
 0x498   :  { %3406 = vmatprep.subr.bf16.mxu1 %v3787_v15 }
 0x49a   :  { %3395 = vmatmul.mubr.msk.bf16.vlgmr.msra.gmra.mrb[32].mxu1 %vm35_vm0, %v3864_v28 }
 0x49b   :  { %3408 = vmatprep.mubr.msk.bf16.mxu1 %vm3788_vm1, %v3787_v15 }
 0x509   :  { %v508_v1 = vpop.xlane.xlu0 %507 }
 0x50a   :  { %3691 = vrcp.f32 %v508_v1 }
 0x50b   :  { %v511_v2 = vpop.xlane.xlu1 %510 }
 0x50c   :  { %3693 = vrcp.f32 %v511_v2 }
 0x514   :  { %v3692_v3 = vpop.eup %3691 }
 0x515   :  { %v514_v7 = vmul.f32 %v3692_v3, %v3684_v50 }
 0x516   :  { %v3694_v5 = vpop.eup %3693 }
 0x517   :  { %v515_v8 = vmul.f32 %v3694_v5, %v3688_v53 }
 0x519   :  { %v574_v10 = vpack.c.bf16 %v515_v8, %v514_v7 }
 0x51b   :  { %3345 = vmatmul.mubr.msk.bf16.vlgmr.msra.gmra.mrb[12].mxu0 %vm239_vm3, %v574_v10 }
 0x51c   :  { %3355 = vmatpush3.bf16.msra.mxu0 %v3633_v9  ;;  %3358 = vmatprep.mubr.msk.bf16.mxu0 %vm3788_vm1, %v3787_v15 }
 0x51d   :  { %3356 = vmatprep.subr.bf16.mxu0 %v3787_v15 }
 0x520   :  { %3357 = vmatpush3.bf16.msra.mxu0 %v3634_v11 }
 0x521   :  { %3370 = vmatprep.subr.bf16.mxu0 %v3787_v15 }
 0x523   :  { %3359 = vmatmul.mubr.msk.bf16.vlgmr.msra.gmra.mrb[16].mxu0 %vm35_vm0, %v3864_v28 }
 0x524   :  { %3372 = vmatprep.mubr.msk.bf16.mxu0 %vm3788_vm1, %v3787_v15 }
 0x555   :  { %v657_v12 = vpop.f32.mrb[20].mxu1 }
 0x556   :  { %v3352_v13 = vpop.f32.mrb[21].mxu1 }
 0x557   :  { %v660_v14 = vpop.f32.mrb[22].mxu1  ;;  %v3635_v13 = vld [vmem:[%s4480_s2 + $0x70] sm:$0xff]  }
 0x558   :  { %v3353_v16 = vpop.f32.mrb[23].mxu1 }
 0x559   :  { %v3636_v16 = vld [vmem:[%s4480_s2 + $0x78] sm:$0xff]  }
 0x55d   :  { %v781_v17 = vpop.f32.mrb[24].mxu1 }
 0x55e   :  { %v3368_v18 = vpop.f32.mrb[25].mxu1 }
 0x55f   :  { %v784_v19 = vpop.f32.mrb[26].mxu1  ;;  %v3638_v18 = vld [vmem:[%s4481_s3 + $0x38] sm:$0xff]  }
 0x560   :  { %v789_v20 = vpack.c.bf16 %v784_v19, %v781_v17  ;;  %v3369_v21 = vpop.f32.mrb[27].mxu1  ;;  %v3637_v17 = vld [vmem:[%s4481_s3 + $0x30] sm:$0xff]  }
 0x562   :  { %v794_v22 = vsel %vm191_vm2, %v789_v20, 0 }
 0x563   :  { %3371 = vmatpush3.bf16.xpose.msra.mxu0 %v794_v22 }
 0x564   :  { %3384 = vmatprep.subr.bf16.mxu0 %v3787_v15 }
 0x565   :  { %v910_v23 = vpop.f32.mrb[28].mxu1 }
 0x566   :  { %v3382_v24 = vpop.f32.mrb[29].mxu1 }
 0x567   :  { %v913_v25 = vpop.f32.mrb[30].mxu1 }
 0x568   :  { %v918_v26 = vpack.c.bf16 %v913_v25, %v910_v23  ;;  %v3383_v27 = vpop.f32.mrb[31].mxu1 }
 0x56d   :  { %v1024_v30 = vpop.f32.mrb[32].mxu1 }
 0x56e   :  { %v3396_v31 = vpop.f32.mrb[33].mxu1  ;;  %v4026_v33 = vadd.f32 %v3006_v29, %v1024_v30 }
 0x56f   :  { %v1027_v32 = vpop.f32.mrb[34].mxu1 }
 0x570   :  { %v4028_v34 = vadd.f32 %v3006_v29, %v1027_v32  ;;  %v3397_v35 = vpop.f32.mrb[35].mxu1 }
 0x572   :  { %v1089_v36 = vpack.c.bf16 %v4028_v34, %v4026_v33 }
 0x5ee   :  { %v613_v37 = vpop.f32.mrb[12].mxu0 }
 0x5ef   :  { %v4032_v38 = vadd.f32 %v657_v12, %v613_v37  ;;  %v3346_v39 = vpop.f32.mrb[13].mxu0 }
 0x5f0   :  { %v616_v40 = vpop.f32.mrb[14].mxu0 }
 0x5f1   :  { %v4034_v41 = vadd.f32 %v660_v14, %v616_v40  ;;  %v3347_v42 = vpop.f32.mrb[15].mxu0 }
 0x5f6   :  { %v723_v44 = vpop.f32.mrb[16].mxu0 }
 0x5f7   :  { %v3360_v45 = vpop.f32.mrb[17].mxu0  ;;  %v724_v47 = vadd.f32 %v2981_v43, %v723_v44 }
 0x5f8   :  { %v726_v46 = vpop.f32.mrb[18].mxu0 }
 0x5f9   :  { %v727_v48 = vadd.f32 %v2981_v43, %v726_v46  ;;  %v3361_v49 = vpop.f32.mrb[19].mxu0 }
 0x5fb   :  { %v788_v50 = vpack.c.bf16 %v727_v48, %v724_v47 }
 0x5fd   :  { %3373 = vmatmul.mubr.msk.bf16.vlgmr.msra.gmra.mrb[20].mxu0 %vm191_vm2, %v788_v50 }
 0x5fe   :  { %3385 = vmatpush3.bf16.msra.mxu0 %v918_v26  ;;  %3386 = vmatprep.mubr.msk.bf16.mxu0 %vm3788_vm1, %v3787_v15 }
 0x5ff   :  { %3398 = vmatprep.subr.bf16.mxu0 %v3787_v15 }
 0x6d0   :  { %v830_v51 = vpop.f32.mrb[20].mxu0 }
 0x6d1   :  { %v831_v52 = vadd.f32 %v830_v51, %v3941_v4  ;;  %v3374_v53 = vpop.f32.mrb[21].mxu0 }
 0x6d2   :  { %v833_v54 = vpop.f32.mrb[22].mxu0 }
 0x6d3   :  { %v834_v55 = vadd.f32 %v833_v54, %v3946_v6  ;;  %v3375_v56 = vpop.f32.mrb[23].mxu0  ;;  %v837_v57 = vsel %vm239_vm3, %v831_v52, -inf }
 0x6d4   :  { %838 = vmax.xlane.f32.xlu0 %v837_v57 }
 0x6d5   :  { %v840_v58 = vsel %vm239_vm3, %v834_v55, -inf }
 0x6d6   :  { %841 = vmax.xlane.f32.xlu1 %v840_v58 }
 0x761   :  { %v839_v59 = vpop.xlane.xlu0 %838 }
 0x762   :  { %v843_v60 = vsub.f32 %v831_v52, %v839_v59 }
 0x763   :  { %v842_v61 = vpop.xlane.xlu1 %841 }
 0x764   :  { %v845_v62 = vmul.f32 1.442695, %v843_v60  ;;  %v844_v63 = vsub.f32 %v834_v55, %v842_v61 }
 0x766   :  { %3695 = vpow2.f32 %v845_v62  ;;  %v847_v0 = vmul.f32 1.442695, %v844_v63 }
 0x768   :  { %3697 = vpow2.f32 %v847_v0  ;;  %v3026_v0 = vld [vmem:[%s4485_s7] ss:$0 sm:$0xff] }
 0x770   :  { %v3696_v1 = vpop.eup %3695 }
 0x771   :  { %v849_v2 = vsel %vm239_vm3, %v3696_v1, 0.0 }
 0x772   :  { %v3698_v3 = vpop.eup %3697  ;;  %850 = vadd.xlane.f32.xlu0 %v849_v2  ;;  %v3759_v2 = vld [vmem:[%s4478_s0] sm:$0xff] }
 0x773   :  { %v852_v5 = vsel %vm239_vm3, %v3698_v3, 0.0 }
 0x774   :  { %853 = vadd.xlane.f32.xlu1 %v852_v5 }
 0x7ff   :  { %v851_v7 = vpop.xlane.xlu0 %850 }
 0x800   :  { %3699 = vrcp.f32 %v851_v7 }
 0x801   :  { %v854_v8 = vpop.xlane.xlu1 %853 }
 0x802   :  { %3701 = vrcp.f32 %v854_v8 }
 0x80a   :  { %v3700_v9 = vpop.eup %3699 }
 0x80b   :  { %v857_v11 = vmul.f32 %v3700_v9, %v3696_v1  ;;  %v3760_v9 = vld [vmem:[%s4478_s0 + $0x8] sm:$0xff]  ;;  %s3763_s0 = scalar_lea.vmem %s2925_s30, 256 }
 0x80c   :  { %v3702_v10 = vpop.eup %3701  ;;  %p3764_p0 = scmp.ne.s32.totalorder %s2925_s30, %s3763_s0  ;;  %p3769_p2 = scmp.lt.s32.totalorder %s3763_s0, %s3763_s0 }
 0x80d   :  { %v858_v12 = vmul.f32 %v3702_v10, %v3698_v3 }
 0x80e   :  { %p3770_p3 = por %p3769_p2, %p3768_p1 }
 0x80f   :  { %v917_v14 = vpack.c.bf16 %v858_v12, %v857_v11 }
 0x810   :  { %p3771_p4 = pnand %p3770_p3, %p3764_p0 }
 0x811   :  { %3387 = vmatmul.mubr.msk.bf16.vlgmr.msra.gmra.mrb[24].mxu0 %vm239_vm3, %v917_v14 }
 0x812   :  { %3399 = vmatpush3.bf16.msra.mxu0 %v3635_v13  ;;  %3402 = vmatprep.mubr.msk.bf16.mxu0 %vm3788_vm1, %v3787_v15 }
 0x813   :  { %3400 = vmatprep.subr.bf16.mxu0 %v3787_v15 }
 0x816   :  { %3401 = vmatpush3.bf16.msra.mxu0 %v3636_v16 }
 0x817   :  { %3412 = vmatprep.subr.bf16.mxu0 %v3787_v15 }
 0x819   :  { %3403 = vmatmul.mubr.msk.bf16.vlgmr.msra.gmra.mrb[28].mxu0 %vm35_vm0, %v3864_v28 }
 0x81a   :  { %3413 = vmatpush3.bf16.msra.mxu0 %v3637_v17  ;;  %3416 = vmatprep.mubr.msk.bf16.mxu0 %vm3788_vm1, %v3787_v15 }
 0x81b   :  { %3414 = vmatprep.subr.bf16.mxu0 %v3787_v15 }
 0x81e   :  { %3415 = vmatpush3.bf16.msra.mxu0 %v3638_v18 }
 0x81f   :  { %3426 = vmatprep.subr.bf16.mxu0 %v3787_v15 }
 0x821   :  { %3417 = vmatmul.mubr.msk.bf16.vlgmr.msra.gmra.mrb[32].mxu0 %vm35_vm0, %v3864_v28 }
 0x822   :  { %3430 = vmatprep.mubr.msk.bf16.mxu0 %vm3788_vm1, %v3787_v15 }
 0x8e4   :  { %v956_v19 = vpop.f32.mrb[24].mxu0 }
 0x8e5   :  { %v963_v20 = vadd.f32 %v956_v19, %v4032_v38  ;;  %v3388_v21 = vpop.f32.mrb[25].mxu0 }
 0x8e6   :  { %v959_v22 = vpop.f32.mrb[26].mxu0 }
 0x8e7   :  { %v964_v23 = vadd.f32 %v959_v22, %v4034_v41  ;;  %v3389_v24 = vpop.f32.mrb[27].mxu0 }
 0x8ec   :  { %v1082_v25 = vpop.f32.mrb[28].mxu0 }
 0x8ed   :  { %v3404_v26 = vpop.f32.mrb[29].mxu0 }
 0x8ee   :  { %v1085_v27 = vpop.f32.mrb[30].mxu0  ;;  %v3640_v26 = vld [vmem:[%s4482_s4 + $0x8] sm:$0xff]  }
 0x8ef   :  { %v1090_v29 = vpack.c.bf16 %v1085_v27, %v1082_v25  ;;  %v3405_v30 = vpop.f32.mrb[31].mxu0  ;;  %v3639_v25 = vld [vmem:[%s4482_s4] sm:$0xff]  }
 0x8f0   :  { %3427 = vmatpush3.bf16.msra.mxu0 %v3639_v25  ;;  %v3641_v27 = vld [vmem:[%s4483_s5] sm:$0xff]  }
 0x8f1   :  { %v1095_v31 = vsel %vm191_vm2, %v1090_v29, 0  ;;  %3428 = vmatprep.subr.bf16.mxu0 %v3787_v15  ;;  %v3642_v29 = vld [vmem:[%s4483_s5 + $0x8] sm:$0xff]  }
 0x8f2   :  { %3407 = vmatpush3.bf16.xpose.msra.mxu1 %v1095_v31 }
 0x8f3   :  { %3420 = vmatprep.subr.bf16.mxu1 %v3787_v15 }
 0x8f4   :  { %v1211_v28 = vpop.f32.mrb[32].mxu0  ;;  %3429 = vmatpush3.bf16.msra.mxu0 %v3640_v26  ;;  %v3648_v26 = vld [vmem:[%s4480_s2 + $0xc8] sm:$0xff]  }
 0x8f5   :  { %v3418_v32 = vpop.f32.mrb[33].mxu0  ;;  %3446 = vmatprep.subr.bf16.mxu0 %v3787_v15 }
 0x8f6   :  { %v1214_v35 = vpop.f32.mrb[34].mxu0 }
 0x8f7   :  { %v1219_v37 = vpack.c.bf16 %v1214_v35, %v1211_v28  ;;  %v3419_v38 = vpop.f32.mrb[35].mxu0 }
 0x8f9   :  { %3409 = vmatmul.mubr.msk.bf16.vlgmr.msra.gmra.mrb[36].mxu1 %vm191_vm2, %v1089_v36 }
 0x8fa   :  { %3421 = vmatpush3.bf16.msra.mxu1 %v1219_v37  ;;  %3422 = vmatprep.mubr.msk.bf16.mxu1 %vm3788_vm1, %v3787_v15 }
 0x8fb   :  { %3434 = vmatprep.subr.bf16.mxu1 %v3787_v15 }
 0x9cc   :  { %v1131_v39 = vpop.f32.mrb[36].mxu1 }
 0x9cd   :  { %v1132_v40 = vadd.f32 %v1131_v39, %v3941_v4  ;;  %v3410_v41 = vpop.f32.mrb[37].mxu1 }
 0x9ce   :  { %v1134_v42 = vpop.f32.mrb[38].mxu1 }
 0x9cf   :  { %v1135_v43 = vadd.f32 %v1134_v42, %v3946_v6  ;;  %v3411_v44 = vpop.f32.mrb[39].mxu1  ;;  %v1138_v45 = vsel %vm239_vm3, %v1132_v40, -inf }
 0x9d0   :  { %1139 = vmax.xlane.f32.xlu0 %v1138_v45  ;;  %v3644_v44 = vld [vmem:[%s4483_s5 + $0x18] sm:$0xff]   ;;  %v3027_v45 = vld [vmem:[%s4485_s7 + $0x1] ss:$0 sm:$0xff] }
 0x9d1   :  { %v1141_v33 = vsel %vm239_vm3, %v1135_v43, -inf }
 0x9d2   :  { %1142 = vmax.xlane.f32.xlu1 %v1141_v33 }
 0xa5d   :  { %v1140_v34 = vpop.xlane.xlu0 %1139 }
 0xa5e   :  { %v1144_v36 = vsub.f32 %v1132_v40, %v1140_v34 }
 0xa5f   :  { %v1143_v46 = vpop.xlane.xlu1 %1142 }
 0xa60   :  { %v1146_v47 = vmul.f32 1.442695, %v1144_v36  ;;  %v1145_v48 = vsub.f32 %v1135_v43, %v1143_v46  ;;  %v3643_v43 = vld [vmem:[%s4483_s5 + $0x10] sm:$0xff]  }
 0xa62   :  { %3703 = vpow2.f32 %v1146_v47  ;;  %v1148_v49 = vmul.f32 1.442695, %v1145_v48 }
 0xa64   :  { %3705 = vpow2.f32 %v1148_v49 }
 0xa6c   :  { %v3704_v50 = vpop.eup %3703 }
 0xa6d   :  { %v1150_v51 = vsel %vm239_vm3, %v3704_v50, 0.0 }
 0xa6e   :  { %v3706_v52 = vpop.eup %3705  ;;  %1151 = vadd.xlane.f32.xlu0 %v1150_v51 }
 0xa6f   :  { %v1153_v53 = vsel %vm239_vm3, %v3706_v52, 0.0 }
 0xa70   :  { %1154 = vadd.xlane.f32.xlu1 %v1153_v53  ;;  %v3036_v53 = vld [vmem:[%s4485_s7 + $0x2] ss:$0 sm:$0xff] }
 0xafb   :  { %v1152_v54 = vpop.xlane.xlu0 %1151 }
 0xafc   :  { %3707 = vrcp.f32 %v1152_v54 }
 0xafd   :  { %v1155_v55 = vpop.xlane.xlu1 %1154 }
 0xafe   :  { %3709 = vrcp.f32 %v1155_v55 }
 0xb06   :  { %v3708_v56 = vpop.eup %3707 }
 0xb07   :  { %v1158_v58 = vmul.f32 %v3708_v56, %v3704_v50 }
 0xb08   :  { %v3710_v57 = vpop.eup %3709 }
 0xb09   :  { %v1159_v59 = vmul.f32 %v3710_v57, %v3706_v52 }
 0xb0b   :  { %v1218_v60 = vpack.c.bf16 %v1159_v59, %v1158_v58 }
 0xb0d   :  { %3423 = vmatmul.mubr.msk.bf16.vlgmr.msra.gmra.mrb[40].mxu1 %vm239_vm3, %v1218_v60 }
 0xb0e   :  { %3442 = vmatprep.mubr.msk.bf16.mxu1 %vm3788_vm1, %v3787_v15  ;;  %3435 = vmatpush3.bf16.msra.mxu1 %v3641_v27  ;;  %v3649_v27 = vld [vmem:[%s4481_s3 + $0x40] sm:$0xff]  }
 0xb0f   :  { %3436 = vmatprep.subr.bf16.mxu1 %v3787_v15 }
 0xb12   :  { %3437 = vmatpush3.bf16.msra.mxu1 %v3642_v29  ;;  %v3650_v29 = vld [vmem:[%s4481_s3 + $0x48] sm:$0xff]  }
 0xb13   :  { %3438 = vmatprep.subr.bf16.mxu1 %v3787_v15 }
 0xb16   :  { %3439 = vmatpush3.bf16.msra.mxu1 %v3643_v43 }
 0xb17   :  { %3440 = vmatprep.subr.bf16.mxu1 %v3787_v15 }
 0xb1a   :  { %3441 = vmatpush3.bf16.msra.mxu1 %v3644_v44 }
 0xb1b   :  { %3462 = vmatprep.subr.bf16.mxu1 %v3787_v15 }
 0xbe0   :  { %v1257_v61 = vpop.f32.mrb[40].mxu1 }
 0xbe1   :  { %v1264_v62 = vadd.f32 %v1257_v61, %v963_v20  ;;  %v3424_v63 = vpop.f32.mrb[41].mxu1 }
 0xbe2   :  { %v1260_v1 = vpop.f32.mrb[42].mxu1 }
 0xbe3   :  { %v1266_v3 = vadd.f32 %v3759_v2, %v1264_v62  ;;  %v1265_v5 = vadd.f32 %v1260_v1, %v964_v23  ;;  %v3425_v7 = vpop.f32.mrb[43].mxu1 }
 0xbe5   :  { %v4102_v8 = vadd.f32 %v3026_v0, %v1266_v3  ;;  %v1267_v10 = vadd.f32 %v3760_v9, %v1265_v5 }
 0xbe7   :  { %v4107_v11 = vadd.f32 %v3026_v0, %v1267_v10  ;;  %v1275_v12 = vsel %vm35_vm0, %v4102_v8, 0.0 }
 0xbe8   :  { %1276 = vadd.xlane.f32.xlu0 %v1275_v12  ;;  %v3646_v12 = vld [vmem:[%s4480_s2 + $0x88] sm:$0xff]  }
 0xbe9   :  { %v1278_v13 = vsel %vm35_vm0, %v4107_v11, 0.0 }
 0xbea   :  { %1279 = vadd.xlane.f32.xlu1 %v1278_v13 }
 0xc75   :  { %v1277_v14 = vpop.xlane.xlu0 %1276 }
 0xc76   :  { %v1281_v16 = vmul.f32 0.03125, %v1277_v14 }
 0xc77   :  { %v1280_v17 = vpop.xlane.xlu1 %1279 }
 0xc78   :  { %v1283_v18 = vsub.f32 %v4102_v8, %v1281_v16  ;;  %v1282_v19 = vmul.f32 0.03125, %v1280_v17 }
 0xc7a   :  { %v1284_v20 = vsub.f32 %v4107_v11, %v1282_v19  ;;  %v1285_v21 = vmul.f32 %v1283_v18, %v1283_v18 }
 0xc7c   :  { %v1287_v22 = vsel %vm35_vm0, %v1285_v21, 0.0  ;;  %v1286_v23 = vmul.f32 %v1284_v20, %v1284_v20 }
 0xc7d   :  { %1288 = vadd.xlane.f32.xlu0 %v1287_v22 }
 0xc7e   :  { %v1290_v24 = vsel %vm35_vm0, %v1286_v23, 0.0 }
 0xc7f   :  { %1291 = vadd.xlane.f32.xlu1 %v1290_v24  ;;  %v3647_v24 = vld [vmem:[%s4480_s2 + $0xc0] sm:$0xff]  }
 0xd0a   :  { %v1289_v30 = vpop.xlane.xlu0 %1288 }
 0xd0b   :  { %v1293_v31 = vmul.f32 0.032258064, %v1289_v30  ;;  %v3651_v30 = vld [vmem:[%s4480_s2 + $0xd0] sm:$0xff]  }
 0xd0c   :  { %v1292_v28 = vpop.xlane.xlu1 %1291 }
 0xd0d   :  { %v1295_v32 = vadd.f32 1e-12, %v1293_v31  ;;  %v1294_v35 = vmul.f32 0.032258064, %v1292_v28  ;;  %v3652_v31 = vld [vmem:[%s4480_s2 + $0xd8] sm:$0xff]   ;;  %v3653_v28 = vld [vmem:[%s4481_s3 + $0x50] sm:$0xff]  }
 0xd0f   :  { %3711 = vrsqrt.f32 %v1295_v32  ;;  %v1296_v37 = vadd.f32 1e-12, %v1294_v35  ;;  %v3654_v32 = vld [vmem:[%s4481_s3 + $0x58] sm:$0xff]   ;;  %v3042_v35 = vld [vmem:[%s4484_s6 + $0x4] ss:$0 sm:$0xff] }
 0xd11   :  { %3713 = vrsqrt.f32 %v1296_v37 }
 0xd19   :  { %v3712_v38 = vpop.eup %3711 }
 0xd1a   :  { %v1299_v40 = vmul.f32 %v3712_v38, %v1283_v18 }
 0xd1b   :  { %v3714_v39 = vpop.eup %3713 }
 0xd1c   :  { %v1300_v41 = vmul.f32 %v3714_v39, %v1284_v20 }
 0xd1e   :  { %v1301_v42 = vpack.c.bf16 %v1300_v41, %v1299_v40 }
 0xd20   :  { %3431 = vmatmul.mubr.msk.bf16.vlgmr.msra.gmra.mrb[36].mxu0 %vm35_vm0, %v1301_v42 }
 0xd21   :  { %3450 = vmatprep.mubr.msk.bf16.mxu0 %vm3788_vm1, %v3787_v15 }
 0xdf3   :  { %v1360_v33 = vpop.f32.mrb[36].mxu0 }
 0xdf4   :  { %v1361_v34 = vadd.f32 %v3027_v45, %v1360_v33  ;;  %v3432_v36 = vpop.f32.mrb[37].mxu0 }
 0xdf5   :  { %v1363_v46 = vpop.f32.mrb[38].mxu0 }
 0xdf6   :  { %v1364_v47 = vadd.f32 %v3027_v45, %v1363_v46  ;;  %v3433_v48 = vpop.f32.mrb[39].mxu0  ;;  %v1367_v49 = vmax.f32 %v1361_v34, 0.0 }
 0xdf8   :  { %v1368_v50 = vmax.f32 %v1364_v47, 0.0 }
 0xdfa   :  { %v1369_v51 = vpack.c.bf16 %v1368_v50, %v1367_v49  ;;  %v3655_v50 = vld [vmem:[%s4480_s2 + $0x90] sm:$0xff]  }
 0xdfc   :  { %3443 = vmatmul.mubr.msk.bf16.vlgmr.msra.gmra.mrb[44].mxu1 %vm1402_vm4, %v1369_v51 }
 0xdfd   :  { %3464 = vmatprep.mubr.msk.bf16.mxu1 %vm3788_vm1, %v3787_v15 }
 0xecf   :  { %v1440_v52 = vpop.f32.mrb[44].mxu1 }
 0xed0   :  { %v1447_v54 = vadd.f32 %v1440_v52, %v4102_v8  ;;  %v3444_v55 = vpop.f32.mrb[45].mxu1 }
 0xed1   :  { %v1443_v56 = vpop.f32.mrb[46].mxu1 }
 0xed2   :  { %v4154_v57 = vadd.f32 %v3036_v53, %v1447_v54  ;;  %v1448_v58 = vadd.f32 %v1443_v56, %v4107_v11  ;;  %v3445_v59 = vpop.f32.mrb[47].mxu1  ;;  %v3645_v11 = vld [vmem:[%s4480_s2 + $0x80] sm:$0xff]  }
 0xed3   :  { %3447 = vmatpush3.bf16.msra.mxu0 %v3645_v11 }
 0xed4   :  { %v4157_v60 = vadd.f32 %v3036_v53, %v1448_v58  ;;  %v1456_v61 = vsel %vm35_vm0, %v4154_v57, 0.0  ;;  %3448 = vmatprep.subr.bf16.mxu0 %v3787_v15  ;;  %v3656_v53 = vld [vmem:[%s4480_s2 + $0x98] sm:$0xff]  }
 0xed5   :  { %1457 = vadd.xlane.f32.xlu0 %v1456_v61 }
 0xed6   :  { %v1459_v62 = vsel %vm35_vm0, %v4157_v60, 0.0 }
 0xed7   :  { %1460 = vadd.xlane.f32.xlu1 %v1459_v62  ;;  %3449 = vmatpush3.bf16.msra.mxu0 %v3646_v12 }
 0xed8   :  { %3454 = vmatprep.subr.bf16.mxu0 %v3787_v15 }
 0xf62   :  { %v1458_v63 = vpop.xlane.xlu0 %1457 }
 0xf63   :  { %v1462_v0 = vmul.f32 0.03125, %v1458_v63 }
 0xf64   :  { %v1461_v1 = vpop.xlane.xlu1 %1460 }
 0xf65   :  { %v1464_v2 = vsub.f32 %v4154_v57, %v1462_v0  ;;  %v1463_v3 = vmul.f32 0.03125, %v1461_v1 }
 0xf67   :  { %v1465_v5 = vsub.f32 %v4157_v60, %v1463_v3  ;;  %v1466_v7 = vmul.f32 %v1464_v2, %v1464_v2 }
 0xf69   :  { %v1468_v8 = vsel %vm35_vm0, %v1466_v7, 0.0  ;;  %v1467_v9 = vmul.f32 %v1465_v5, %v1465_v5 }
 0xf6a   :  { %1469 = vadd.xlane.f32.xlu0 %v1468_v8 }
 0xf6b   :  { %v1471_v10 = vsel %vm35_vm0, %v1467_v9, 0.0 }
 0xf6c   :  { %1472 = vadd.xlane.f32.xlu1 %v1471_v10 }
 0xff7   :  { %v1470_v13 = vpop.xlane.xlu0 %1469 }
 0xff8   :  { %v1474_v14 = vmul.f32 0.032258064, %v1470_v13  ;;  %v3066_v13 = vld [vmem:[%s4484_s6 + $0x5] ss:$0 sm:$0xff] }
 0xff9   :  { %v1473_v16 = vpop.xlane.xlu1 %1472 }
 0xffa   :  { %v1476_v17 = vadd.f32 1e-12, %v1474_v14  ;;  %v1475_v18 = vmul.f32 0.032258064, %v1473_v16 }
 0xffc   :  { %3715 = vrsqrt.f32 %v1476_v17  ;;  %v1477_v19 = vadd.f32 1e-12, %v1475_v18 }
 0xffe   :  { %3717 = vrsqrt.f32 %v1477_v19 }
0x1006   :  { %v3716_v20 = vpop.eup %3715 }
0x1007   :  { %v1480_v22 = vmul.f32 %v3716_v20, %v1464_v2 }
0x1008   :  { %v3718_v21 = vpop.eup %3717 }
0x1009   :  { %v1481_v23 = vmul.f32 %v3718_v21, %v1465_v5 }
0x100b   :  { %v4178_v25 = vpack.c.bf16 %v1481_v23, %v1480_v22 }
0x100d   :  { %3451 = vmatmul.mubr.msk.bf16.vlgmr.msra.gmra.mrb[40].mxu0 %vm35_vm0, %v4178_v25 }
0x100e   :  { %3455 = vmatpush3.bf16.msra.mxu0 %v3647_v24  ;;  %3458 = vmatprep.mubr.msk.bf16.mxu0 %vm3788_vm1, %v3787_v15 }
0x100f   :  { %3456 = vmatprep.subr.bf16.mxu0 %v3787_v15 }
0x1012   :  { %3457 = vmatpush3.bf16.msra.mxu0 %v3648_v26 }
0x1013   :  { %3468 = vmatprep.subr.bf16.mxu0 %v3787_v15 }
0x1015   :  { %3459 = vmatmul.mubr.msk.bf16.vlgmr.msra.gmra.mrb[44].mxu0 %vm35_vm0, %v4178_v25 }
0x1016   :  { %3469 = vmatpush3.bf16.msra.mxu0 %v3649_v27  ;;  %3472 = vmatprep.mubr.msk.bf16.mxu0 %vm3788_vm1, %v3787_v15 }
0x1017   :  { %3470 = vmatprep.subr.bf16.mxu0 %v3787_v15 }
0x101a   :  { %3471 = vmatpush3.bf16.msra.mxu0 %v3650_v29 }
0x101b   :  { %3484 = vmatprep.subr.bf16.mxu0 %v3787_v15 }
0x101d   :  { %3473 = vmatmul.mubr.msk.bf16.vlgmr.msra.gmra.mrb[48].mxu0 %vm35_vm0, %v4178_v25 }
0x101e   :  { %3485 = vmatpush3.bf16.msra.mxu0 %v3651_v30  ;;  %3488 = vmatprep.mubr.msk.bf16.mxu0 %vm3788_vm1, %v3787_v15 }
0x101f   :  { %3486 = vmatprep.subr.bf16.mxu0 %v3787_v15 }
0x1022   :  { %3487 = vmatpush3.bf16.msra.mxu0 %v3652_v31 }
0x1023   :  { %3498 = vmatprep.subr.bf16.mxu0 %v3787_v15 }
0x1025   :  { %3489 = vmatmul.mubr.msk.bf16.vlgmr.msra.gmra.mrb[52].mxu0 %vm35_vm0, %v4178_v25 }
0x1026   :  { %3499 = vmatpush3.bf16.msra.mxu0 %v3653_v28  ;;  %3502 = vmatprep.mubr.msk.bf16.mxu0 %vm3788_vm1, %v3787_v15 }
0x1027   :  { %3500 = vmatprep.subr.bf16.mxu0 %v3787_v15 }
0x102a   :  { %3501 = vmatpush3.bf16.msra.mxu0 %v3654_v32 }
0x102b   :  { %3512 = vmatprep.subr.bf16.mxu0 %v3787_v15 }
0x102d   :  { %3503 = vmatmul.mubr.msk.bf16.vlgmr.msra.gmra.mrb[56].mxu0 %vm35_vm0, %v4178_v25 }
0x102e   :  { %3514 = vmatprep.mubr.msk.bf16.mxu0 %vm3788_vm1, %v3787_v15 }
0x10e0   :  { %v1545_v37 = vpop.f32.mrb[40].mxu0 }
0x10e1   :  { %v3452_v38 = vpop.f32.mrb[41].mxu0  ;;  %v1546_v40 = vadd.f32 %v3042_v35, %v1545_v37 }
0x10e2   :  { %v1548_v39 = vpop.f32.mrb[42].mxu0 }
0x10e3   :  { %v1549_v41 = vadd.f32 %v3042_v35, %v1548_v39  ;;  %v3453_v42 = vpop.f32.mrb[43].mxu0 }
0x10e5   :  { %v1610_v43 = vpack.c.bf16 %v1549_v41, %v1546_v40 }
0x10e8   :  { %v1603_v44 = vpop.f32.mrb[44].mxu0 }
0x10e9   :  { %v3460_v45 = vpop.f32.mrb[45].mxu0 }
0x10ea   :  { %v1606_v33 = vpop.f32.mrb[46].mxu0 }
0x10eb   :  { %v1611_v34 = vpack.c.bf16 %v1606_v33, %v1603_v44  ;;  %v3461_v36 = vpop.f32.mrb[47].mxu0 }
0x10ed   :  { %v1616_v46 = vsel %vm191_vm2, %v1611_v34, 0 }
0x10ee   :  { %3463 = vmatpush3.bf16.xpose.msra.mxu1 %v1616_v46 }
0x10ef   :  { %3476 = vmatprep.subr.bf16.mxu1 %v3787_v15 }
0x10f0   :  { %v1732_v47 = vpop.f32.mrb[48].mxu0 }
0x10f1   :  { %v3474_v48 = vpop.f32.mrb[49].mxu0 }
0x10f2   :  { %v1735_v49 = vpop.f32.mrb[50].mxu0 }
0x10f3   :  { %v1740_v51 = vpack.c.bf16 %v1735_v49, %v1732_v47  ;;  %v3475_v52 = vpop.f32.mrb[51].mxu0 }
0x10f5   :  { %3465 = vmatmul.mubr.msk.bf16.vlgmr.msra.gmra.mrb[48].mxu1 %vm191_vm2, %v1610_v43  ;;  %3513 = vmatpush3.bf16.msra.mxu0 %v1740_v51 }
0x10f6   :  { %3477 = vmatpush3.bf16.msra.mxu1 %v3655_v50  ;;  %3480 = vmatprep.mubr.msk.bf16.mxu1 %vm3788_vm1, %v3787_v15 }
0x10f7   :  { %3478 = vmatprep.subr.bf16.mxu1 %v3787_v15  ;;  %3526 = vmatprep.subr.bf16.mxu0 %v3787_v15 }
0x10f8   :  { %v1858_v54 = vpop.f32.mrb[52].mxu0 }
0x10f9   :  { %v3490_v55 = vpop.f32.mrb[53].mxu0 }
0x10fa   :  { %3479 = vmatpush3.bf16.msra.mxu1 %v3656_v53  ;;  %v1861_v56 = vpop.f32.mrb[54].mxu0  ;;  %v3657_v55 = vld [vmem:[%s4480_s2 + $0xe0] sm:$0xff]  }
0x10fb   :  { %v1866_v58 = vpack.c.bf16 %v1861_v56, %v1858_v54  ;;  %v3491_v59 = vpop.f32.mrb[55].mxu0  ;;  %3492 = vmatprep.subr.bf16.mxu1 %v3787_v15 }
0x10fc   :  { %v3659_v59 = vld [vmem:[%s4481_s3 + $0x60] sm:$0xff]  }
0x10fd   :  { %3481 = vmatmul.mubr.msk.bf16.vlgmr.msra.gmra.mrb[52].mxu1 %vm35_vm0, %v4178_v25  ;;  %v1871_v63 = vsel %vm191_vm2, %v1866_v58, 0  ;;  %v3658_v58 = vld [vmem:[%s4480_s2 + $0xe8] sm:$0xff]  }
0x10fe   :  { %3494 = vmatprep.mubr.msk.bf16.mxu1 %vm3788_vm1, %v3787_v15 }
0x1100   :  { %v1987_v61 = vpop.f32.mrb[56].mxu0 }
0x1101   :  { %v3504_v62 = vpop.f32.mrb[57].mxu0 }
0x1102   :  { %v1990_v0 = vpop.f32.mrb[58].mxu0  ;;  %v3661_v62 = vld [vmem:[%s4480_s2 + $0xb0] sm:$0xff]  }
0x1103   :  { %v1995_v1 = vpack.c.bf16 %v1990_v0, %v1987_v61  ;;  %3493 = vmatpush3.bf16.xpose.msra.mxu1 %v1871_v63  ;;  %v3505_v2 = vpop.f32.mrb[59].mxu0  ;;  %v3660_v61 = vld [vmem:[%s4481_s3 + $0x68] sm:$0xff]   ;;  %v3662_v63 = vld [vmem:[%s4480_s2 + $0xb8] sm:$0xff]  }
0x1104   :  { %3506 = vmatprep.subr.bf16.mxu1 %v3787_v15 }
0x11c8   :  { %v1652_v3 = vpop.f32.mrb[48].mxu1 }
0x11c9   :  { %v1653_v5 = vadd.f32 %v1652_v3, %v3941_v4  ;;  %v3466_v7 = vpop.f32.mrb[49].mxu1 }
0x11ca   :  { %v1655_v8 = vpop.f32.mrb[50].mxu1 }
0x11cb   :  { %v1656_v9 = vadd.f32 %v1655_v8, %v3946_v6  ;;  %v3467_v10 = vpop.f32.mrb[51].mxu1  ;;  %v1659_v11 = vsel %vm239_vm3, %v1653_v5, -inf  ;;  %v3663_v8 = vld [vmem:[%s4480_s2 + $0xa0] sm:$0xff]  }
0x11cc   :  { %1660 = vmax.xlane.f32.xlu0 %v1659_v11  ;;  %v3664_v10 = vld [vmem:[%s4480_s2 + $0xa8] sm:$0xff]  }
0x11cd   :  { %v1662_v12 = vsel %vm239_vm3, %v1656_v9, -inf }
0x11ce   :  { %1663 = vmax.xlane.f32.xlu1 %v1662_v12 }
0x11d0   :  { %v1800_v14 = vpop.f32.mrb[52].mxu1 }
0x11d1   :  { %v3482_v16 = vpop.f32.mrb[53].mxu1  ;;  %v1801_v18 = vadd.f32 %v3066_v13, %v1800_v14 }
0x11d2   :  { %v1803_v17 = vpop.f32.mrb[54].mxu1 }
0x11d3   :  { %v1804_v19 = vadd.f32 %v3066_v13, %v1803_v17  ;;  %v3483_v20 = vpop.f32.mrb[55].mxu1 }
0x11d5   :  { %v1865_v21 = vpack.c.bf16 %v1804_v19, %v1801_v18 }
0x11d7   :  { %3495 = vmatmul.mubr.msk.bf16.vlgmr.msra.gmra.mrb[56].mxu1 %vm191_vm2, %v1865_v21 }
0x11d8   :  { %3507 = vmatpush3.bf16.msra.mxu1 %v1995_v1  ;;  %3508 = vmatprep.mubr.msk.bf16.mxu1 %vm3788_vm1, %v3787_v15 }
0x11d9   :  { %3518 = vmatprep.subr.bf16.mxu1 %v3787_v15 }
0x1259   :  { %v1661_v22 = vpop.xlane.xlu0 %1660 }
0x125a   :  { %v1665_v24 = vsub.f32 %v1653_v5, %v1661_v22 }
0x125b   :  { %v1664_v23 = vpop.xlane.xlu1 %1663 }
0x125c   :  { %v1666_v26 = vsub.f32 %v1656_v9, %v1664_v23  ;;  %v1667_v27 = vmul.f32 1.442695, %v1665_v24 }
0x125e   :  { %v1669_v29 = vmul.f32 1.442695, %v1666_v26  ;;  %3719 = vpow2.f32 %v1667_v27 }
0x1260   :  { %3721 = vpow2.f32 %v1669_v29  ;;  %v3117_v29 = vld [vmem:[%s4484_s6 + $0x7] ss:$0 sm:$0xff] }
0x1268   :  { %v3720_v39 = vpop.eup %3719 }
0x1269   :  { %v1671_v42 = vsel %vm239_vm3, %v3720_v39, 0.0 }
0x126a   :  { %v3722_v41 = vpop.eup %3721 }
0x126b   :  { %v1674_v43 = vsel %vm239_vm3, %v3722_v41, 0.0 }
0x12aa   :  { %v1907_v30 = vpop.f32.mrb[56].mxu1 }
0x12ab   :  { %v1908_v31 = vadd.f32 %v1907_v30, %v3941_v4  ;;  %v3496_v28 = vpop.f32.mrb[57].mxu1 }
0x12ac   :  { %v1910_v32 = vpop.f32.mrb[58].mxu1 }
0x12ad   :  { %v1911_v35 = vadd.f32 %v1910_v32, %v3946_v6  ;;  %v3497_v37 = vpop.f32.mrb[59].mxu1  ;;  %v1914_v38 = vsel %vm239_vm3, %v1908_v31, -inf }
0x12ae   :  { %1915 = vmax.xlane.f32.xlu0 %v1914_v38 }
0x12af   :  { %v1917_v40 = vsel %vm239_vm3, %v1911_v35, -inf }
0x12b0   :  { %1918 = vmax.xlane.f32.xlu1 %v1917_v40 }
0x12b2   :  { %1672 = vadd.xlane.f32.xlu0 %v1671_v42 }
0x12b4   :  { %1675 = vadd.xlane.f32.xlu1 %v1674_v43 }
0x133b   :  { %v1916_v4 = vpop.xlane.xlu0 %1915 }
0x133c   :  { %v1920_v44 = vsub.f32 %v1908_v31, %v1916_v4 }
0x133d   :  { %v1919_v45 = vpop.xlane.xlu1 %1918 }
0x133e   :  { %v1922_v33 = vmul.f32 1.442695, %v1920_v44  ;;  %v1921_v6 = vsub.f32 %v1911_v35, %v1919_v45  ;;  %v3092_v44 = vld [vmem:[%s4484_s6 + $0x6] ss:$0 sm:$0xff] }
0x133f   :  { %v1673_v34 = vpop.xlane.xlu0 %1672 }
0x1340   :  { %3723 = vpow2.f32 %v1922_v33  ;;  %v1924_v36 = vmul.f32 1.442695, %v1921_v6 }
0x1341   :  { %3725 = vrcp.f32 %v1673_v34  ;;  %v1676_v46 = vpop.xlane.xlu1 %1675 }
0x1342   :  { %3727 = vpow2.f32 %v1924_v36 }
0x1343   :  { %3729 = vrcp.f32 %v1676_v46 }
0x134a   :  { %v3724_v47 = vpop.eup %3723 }
0x134b   :  { %v3726_v48 = vpop.eup %3725  ;;  %v1926_v49 = vsel %vm239_vm3, %v3724_v47, 0.0 }
0x134c   :  { %v3728_v50 = vpop.eup %3727  ;;  %1927 = vadd.xlane.f32.xlu0 %v1926_v49  ;;  %v1679_v53 = vmul.f32 %v3726_v48, %v3720_v39  ;;  %v4350_v49 = vld [vmem:[%s4479_s1] sm:$0xff] }
0x134d   :  { %v3730_v51 = vpop.eup %3729  ;;  %v1929_v52 = vsel %vm239_vm3, %v3728_v50, 0.0 }
0x134e   :  { %v1680_v54 = vmul.f32 %v3730_v51, %v3722_v41  ;;  %1930 = vadd.xlane.f32.xlu1 %v1929_v52 }
0x1350   :  { %v1739_v56 = vpack.c.bf16 %v1680_v54, %v1679_v53  ;;  %v4356_v53 = vld [vmem:[%s4479_s1 + $0x8] sm:$0xff] }
0x1352   :  { %3515 = vmatmul.mubr.msk.bf16.vlgmr.msra.gmra.mrb[60].mxu0 %vm239_vm3, %v1739_v56 }
0x1353   :  { %3527 = vmatpush3.bf16.msra.mxu0 %v3657_v55  ;;  %3530 = vmatprep.mubr.msk.bf16.mxu0 %vm3788_vm1, %v3787_v15 }
0x1354   :  { %3528 = vmatprep.subr.bf16.mxu0 %v3787_v15 }
0x1357   :  { %3529 = vmatpush3.bf16.msra.mxu0 %v3658_v58 }
0x1358   :  { %3540 = vmatprep.subr.bf16.mxu0 %v3787_v15 }
0x135a   :  { %3531 = vmatmul.mubr.msk.bf16.vlgmr.msra.gmra.mrb[64].mxu0 %vm35_vm0, %v4178_v25 }
0x135b   :  { %3541 = vmatpush3.bf16.msra.mxu0 %v3659_v59  ;;  %3544 = vmatprep.mubr.msk.bf16.mxu0 %vm3788_vm1, %v3787_v15 }
0x135c   :  { %3542 = vmatprep.subr.bf16.mxu0 %v3787_v15 }
0x135f   :  { %3543 = vmatpush3.bf16.msra.mxu0 %v3660_v61 }
0x1360   :  { %3554 = vmatprep.subr.bf16.mxu0 %v3787_v15 }
0x1362   :  { %3545 = vmatmul.mubr.msk.bf16.vlgmr.msra.gmra.mrb[68].mxu0 %vm35_vm0, %v4178_v25 }
0x1363   :  { %3555 = vmatpush3.bf16.msra.mxu0 %v3661_v62  ;;  %3558 = vmatprep.mubr.msk.bf16.mxu0 %vm3788_vm1, %v3787_v15 }
0x1364   :  { %3556 = vmatprep.subr.bf16.mxu0 %v3787_v15 }
0x1367   :  { %3557 = vmatpush3.bf16.msra.mxu0 %v3662_v63 }
0x1368   :  { %3570 = vmatprep.subr.bf16.mxu0 %v3787_v15 }
0x136a   :  { %3559 = vmatmul.mubr.msk.bf16.vlgmr.msra.gmra.mrb[72].mxu0 %vm35_vm0, %v4178_v25 }
0x136b   :  { %3572 = vmatprep.mubr.msk.bf16.mxu0 %vm3788_vm1, %v3787_v15 }
0x13d9   :  { %v1928_v0 = vpop.xlane.xlu0 %1927 }
0x13da   :  { %3731 = vrcp.f32 %v1928_v0 }
0x13db   :  { %v1931_v1 = vpop.xlane.xlu1 %1930 }
0x13dc   :  { %3733 = vrcp.f32 %v1931_v1 }
0x13e4   :  { %v3732_v2 = vpop.eup %3731 }
0x13e5   :  { %v1934_v5 = vmul.f32 %v3732_v2, %v3724_v47 }
0x13e6   :  { %v3734_v3 = vpop.eup %3733 }
0x13e7   :  { %v1935_v7 = vmul.f32 %v3734_v3, %v3728_v50 }
0x13e9   :  { %v1994_v9 = vpack.c.bf16 %v1935_v7, %v1934_v5 }
0x13eb   :  { %3509 = vmatmul.mubr.msk.bf16.vlgmr.msra.gmra.mrb[60].mxu1 %vm239_vm3, %v1994_v9 }
0x13ec   :  { %3519 = vmatpush3.bf16.msra.mxu1 %v3663_v8  ;;  %3522 = vmatprep.mubr.msk.bf16.mxu1 %vm3788_vm1, %v3787_v15 }
0x13ed   :  { %3520 = vmatprep.subr.bf16.mxu1 %v3787_v15 }
0x13f0   :  { %3521 = vmatpush3.bf16.msra.mxu1 %v3664_v10 }
0x13f1   :  { %3534 = vmatprep.subr.bf16.mxu1 %v3787_v15 }
0x13f3   :  { %3523 = vmatmul.mubr.msk.bf16.vlgmr.msra.gmra.mrb[64].mxu1 %vm35_vm0, %v4178_v25 }
0x13f4   :  { %3536 = vmatprep.mubr.msk.bf16.mxu1 %vm3788_vm1, %v3787_v15 }
0x1425   :  { %v2077_v11 = vpop.f32.mrb[60].mxu0 }
0x1426   :  { %v3516_v12 = vpop.f32.mrb[61].mxu0 }
0x1427   :  { %v2080_v13 = vpop.f32.mrb[62].mxu0 }
0x1428   :  { %v3517_v14 = vpop.f32.mrb[63].mxu0 }
0x1429   :  { %v3665_v14 = vld [vmem:[%s4480_s2 + $0xf0] sm:$0xff]  }
0x142d   :  { %v2201_v16 = vpop.f32.mrb[64].mxu0 }
0x142e   :  { %v3532_v17 = vpop.f32.mrb[65].mxu0 }
0x142f   :  { %v2204_v18 = vpop.f32.mrb[66].mxu0  ;;  %v3666_v17 = vld [vmem:[%s4480_s2 + $0xf8] sm:$0xff]  }
0x1430   :  { %v2209_v19 = vpack.c.bf16 %v2204_v18, %v2201_v16  ;;  %v3533_v20 = vpop.f32.mrb[67].mxu0  ;;  %v3667_v18 = vld [vmem:[%s4481_s3 + $0x70] sm:$0xff]  }
0x1432   :  { %v2214_v21 = vsel %vm191_vm2, %v2209_v19, 0  ;;  %v3668_v19 = vld [vmem:[%s4481_s3 + $0x78] sm:$0xff]  }
0x1433   :  { %3535 = vmatpush3.bf16.xpose.msra.mxu1 %v2214_v21 }
0x1434   :  { %3548 = vmatprep.subr.bf16.mxu1 %v3787_v15 }
0x1435   :  { %v2330_v22 = vpop.f32.mrb[68].mxu0 }
0x1436   :  { %v3546_v23 = vpop.f32.mrb[69].mxu0 }
0x1437   :  { %v2333_v24 = vpop.f32.mrb[70].mxu0 }
0x1438   :  { %v2338_v26 = vpack.c.bf16 %v2333_v24, %v2330_v22  ;;  %v3547_v27 = vpop.f32.mrb[71].mxu0 }
0x143d   :  { %v2444_v30 = vpop.f32.mrb[72].mxu0 }
0x143e   :  { %v3560_v31 = vpop.f32.mrb[73].mxu0  ;;  %v4330_v32 = vadd.f32 %v3117_v29, %v2444_v30 }
0x143f   :  { %v2447_v28 = vpop.f32.mrb[74].mxu0 }
0x1440   :  { %v4332_v35 = vadd.f32 %v3117_v29, %v2447_v28  ;;  %v3561_v37 = vpop.f32.mrb[75].mxu0 }
0x1442   :  { %v2509_v38 = vpack.c.bf16 %v4332_v35, %v4330_v32 }
0x14be   :  { %v2033_v39 = vpop.f32.mrb[60].mxu1 }
0x14bf   :  { %v4336_v40 = vadd.f32 %v2077_v11, %v2033_v39  ;;  %v3510_v41 = vpop.f32.mrb[61].mxu1 }
0x14c0   :  { %v2036_v42 = vpop.f32.mrb[62].mxu1 }
0x14c1   :  { %v4338_v43 = vadd.f32 %v2080_v13, %v2036_v42  ;;  %v3511_v4 = vpop.f32.mrb[63].mxu1 }
0x14c6   :  { %v2143_v45 = vpop.f32.mrb[64].mxu1 }
0x14c7   :  { %v3524_v33 = vpop.f32.mrb[65].mxu1  ;;  %v2144_v34 = vadd.f32 %v3092_v44, %v2143_v45 }
0x14c8   :  { %v2146_v6 = vpop.f32.mrb[66].mxu1 }
0x14c9   :  { %v2147_v36 = vadd.f32 %v3092_v44, %v2146_v6  ;;  %v3525_v46 = vpop.f32.mrb[67].mxu1 }
0x14cb   :  { %v2208_v47 = vpack.c.bf16 %v2147_v36, %v2144_v34 }
0x14cd   :  { %3537 = vmatmul.mubr.msk.bf16.vlgmr.msra.gmra.mrb[68].mxu1 %vm191_vm2, %v2208_v47 }
0x14ce   :  { %3549 = vmatpush3.bf16.msra.mxu1 %v2338_v26  ;;  %3550 = vmatprep.mubr.msk.bf16.mxu1 %vm3788_vm1, %v3787_v15 }
0x14cf   :  { %3562 = vmatprep.subr.bf16.mxu1 %v3787_v15 }
0x15a0   :  { %v2250_v48 = vpop.f32.mrb[68].mxu1 }
0x15a1   :  { %v2251_v50 = vadd.f32 %v4350_v49, %v2250_v48  ;;  %v3538_v51 = vpop.f32.mrb[69].mxu1 }
0x15a2   :  { %v2253_v52 = vpop.f32.mrb[70].mxu1 }
0x15a3   :  { %v2254_v54 = vadd.f32 %v4356_v53, %v2253_v52  ;;  %v3539_v55 = vpop.f32.mrb[71].mxu1  ;;  %v2257_v56 = vsel %vm239_vm3, %v2251_v50, -inf }
0x15a4   :  { %2258 = vmax.xlane.f32.xlu0 %v2257_v56 }
0x15a5   :  { %v2260_v58 = vsel %vm239_vm3, %v2254_v54, -inf }
0x15a6   :  { %2261 = vmax.xlane.f32.xlu1 %v2260_v58 }
0x1631   :  { %v2259_v59 = vpop.xlane.xlu0 %2258 }
0x1632   :  { %v2263_v61 = vsub.f32 %v2251_v50, %v2259_v59 }
0x1633   :  { %v2262_v62 = vpop.xlane.xlu1 %2261 }
0x1634   :  { %v2265_v63 = vmul.f32 1.442695, %v2263_v61  ;;  %v2264_v0 = vsub.f32 %v2254_v54, %v2262_v62 }
0x1636   :  { %3735 = vpow2.f32 %v2265_v63  ;;  %v2267_v1 = vmul.f32 1.442695, %v2264_v0 }
0x1638   :  { %3737 = vpow2.f32 %v2267_v1  ;;  %v3137_v1 = vld [vmem:[%s4485_s7 + $0x3] ss:$0 sm:$0xff] }
0x1640   :  { %v3736_v2 = vpop.eup %3735 }
0x1641   :  { %v2269_v3 = vsel %vm239_vm3, %v3736_v2, 0.0 }
0x1642   :  { %v3738_v5 = vpop.eup %3737  ;;  %2270 = vadd.xlane.f32.xlu0 %v2269_v3 }
0x1643   :  { %v2272_v7 = vsel %vm239_vm3, %v3738_v5, 0.0 }
0x1644   :  { %2273 = vadd.xlane.f32.xlu1 %v2272_v7 }
0x16cf   :  { %v2271_v8 = vpop.xlane.xlu0 %2270 }
0x16d0   :  { %3739 = vrcp.f32 %v2271_v8 }
0x16d1   :  { %v2274_v9 = vpop.xlane.xlu1 %2273 }
0x16d2   :  { %3741 = vrcp.f32 %v2274_v9 }
0x16da   :  { %v3740_v10 = vpop.eup %3739 }
0x16db   :  { %v2277_v12 = vmul.f32 %v3740_v10, %v3736_v2 }
0x16dc   :  { %v3742_v11 = vpop.eup %3741 }
0x16dd   :  { %v2278_v13 = vmul.f32 %v3742_v11, %v3738_v5 }
0x16df   :  { %v2337_v16 = vpack.c.bf16 %v2278_v13, %v2277_v12 }
0x16e1   :  { %3551 = vmatmul.mubr.msk.bf16.vlgmr.msra.gmra.mrb[72].mxu1 %vm239_vm3, %v2337_v16 }
0x16e2   :  { %3563 = vmatpush3.bf16.msra.mxu1 %v3665_v14  ;;  %3566 = vmatprep.mubr.msk.bf16.mxu1 %vm3788_vm1, %v3787_v15 }
0x16e3   :  { %3564 = vmatprep.subr.bf16.mxu1 %v3787_v15 }
0x16e6   :  { %3565 = vmatpush3.bf16.msra.mxu1 %v3666_v17 }
0x16e7   :  { %3576 = vmatprep.subr.bf16.mxu1 %v3787_v15 }
0x16e9   :  { %3567 = vmatmul.mubr.msk.bf16.vlgmr.msra.gmra.mrb[76].mxu1 %vm35_vm0, %v4178_v25 }
0x16ea   :  { %3577 = vmatpush3.bf16.msra.mxu1 %v3667_v18  ;;  %3580 = vmatprep.mubr.msk.bf16.mxu1 %vm3788_vm1, %v3787_v15 }
0x16eb   :  { %3578 = vmatprep.subr.bf16.mxu1 %v3787_v15 }
0x16ee   :  { %3579 = vmatpush3.bf16.msra.mxu1 %v3668_v19 }
0x16ef   :  { %3590 = vmatprep.subr.bf16.mxu1 %v3787_v15 }
0x16f1   :  { %3581 = vmatmul.mubr.msk.bf16.vlgmr.msra.gmra.mrb[80].mxu1 %vm35_vm0, %v4178_v25 }
0x16f2   :  { %3594 = vmatprep.mubr.msk.bf16.mxu1 %vm3788_vm1, %v3787_v15 }
0x17b4   :  { %v2376_v20 = vpop.f32.mrb[72].mxu1 }
0x17b5   :  { %v2383_v21 = vadd.f32 %v2376_v20, %v4336_v40  ;;  %v3552_v22 = vpop.f32.mrb[73].mxu1 }
0x17b6   :  { %v2379_v23 = vpop.f32.mrb[74].mxu1  ;;  %v3669_v22 = vld [vmem:[%s4482_s4 + $0x10] sm:$0xff]  }
0x17b7   :  { %v2384_v24 = vadd.f32 %v2379_v23, %v4338_v43  ;;  %v3553_v26 = vpop.f32.mrb[75].mxu1  ;;  %3591 = vmatpush3.bf16.msra.mxu1 %v3669_v22  ;;  %v3670_v23 = vld [vmem:[%s4482_s4 + $0x18] sm:$0xff]  }
0x17b8   :  { %3592 = vmatprep.subr.bf16.mxu1 %v3787_v15  ;;  %v3672_v26 = vld [vmem:[%s4483_s5 + $0x28] sm:$0xff]  }
0x17bb   :  { %3593 = vmatpush3.bf16.msra.mxu1 %v3670_v23 }
0x17bc   :  { %v2502_v27 = vpop.f32.mrb[76].mxu1 }
0x17bd   :  { %v3568_v29 = vpop.f32.mrb[77].mxu1 }
0x17be   :  { %v2505_v30 = vpop.f32.mrb[78].mxu1 }
0x17bf   :  { %v2510_v31 = vpack.c.bf16 %v2505_v30, %v2502_v27  ;;  %v3569_v28 = vpop.f32.mrb[79].mxu1 }
0x17c1   :  { %v2515_v37 = vsel %vm191_vm2, %v2510_v31, 0 }
0x17c2   :  { %3571 = vmatpush3.bf16.xpose.msra.mxu0 %v2515_v37 }
0x17c3   :  { %3584 = vmatprep.subr.bf16.mxu0 %v3787_v15 }
0x17c4   :  { %v2631_v25 = vpop.f32.mrb[80].mxu1 }
0x17c5   :  { %v3582_v39 = vpop.f32.mrb[81].mxu1 }
0x17c6   :  { %v2634_v41 = vpop.f32.mrb[82].mxu1 }
0x17c7   :  { %v2639_v42 = vpack.c.bf16 %v2634_v41, %v2631_v25  ;;  %v3583_v40 = vpop.f32.mrb[83].mxu1 }
0x17c9   :  { %3573 = vmatmul.mubr.msk.bf16.vlgmr.msra.gmra.mrb[76].mxu0 %vm191_vm2, %v2509_v38 }
0x17ca   :  { %3585 = vmatpush3.bf16.msra.mxu0 %v2639_v42  ;;  %3586 = vmatprep.mubr.msk.bf16.mxu0 %vm3788_vm1, %v3787_v15 }
0x17cb   :  { %3598 = vmatprep.subr.bf16.mxu0 %v3787_v15 }
0x189c   :  { %v2551_v43 = vpop.f32.mrb[76].mxu0 }
0x189d   :  { %v2552_v4 = vadd.f32 %v4350_v49, %v2551_v43  ;;  %v3574_v44 = vpop.f32.mrb[77].mxu0  ;;  %v3673_v43 = vld [vmem:[%s4483_s5 + $0x30] sm:$0xff]  }
0x189e   :  { %v2554_v45 = vpop.f32.mrb[78].mxu0  ;;  %v3142_v44 = vld [vmem:[%s4485_s7 + $0x4] ss:$0 sm:$0xff] }
0x189f   :  { %v2555_v33 = vadd.f32 %v4356_v53, %v2554_v45  ;;  %v3575_v6 = vpop.f32.mrb[79].mxu0  ;;  %v2558_v34 = vsel %vm239_vm3, %v2552_v4, -inf }
0x18a0   :  { %2559 = vmax.xlane.f32.xlu0 %v2558_v34 }
0x18a1   :  { %v2561_v32 = vsel %vm239_vm3, %v2555_v33, -inf }
0x18a2   :  { %2562 = vmax.xlane.f32.xlu1 %v2561_v32 }
0x192d   :  { %v2560_v35 = vpop.xlane.xlu0 %2559 }
0x192e   :  { %v2564_v38 = vsub.f32 %v2552_v4, %v2560_v35  ;;  %v3674_v4 = vld [vmem:[%s4483_s5 + $0x38] sm:$0xff]  }
0x192f   :  { %v2563_v36 = vpop.xlane.xlu1 %2562 }
0x1930   :  { %v2566_v46 = vmul.f32 1.442695, %v2564_v38  ;;  %v2565_v47 = vsub.f32 %v2555_v33, %v2563_v36 }
0x1932   :  { %3743 = vpow2.f32 %v2566_v46  ;;  %v2568_v48 = vmul.f32 1.442695, %v2565_v47  ;;  %v3159_v47 = vld [vmem:[%s4485_s7 + $0x5] ss:$0 sm:$0xff] }
0x1934   :  { %3745 = vpow2.f32 %v2568_v48 }
0x193c   :  { %v3744_v49 = vpop.eup %3743 }
0x193d   :  { %v2570_v50 = vsel %vm239_vm3, %v3744_v49, 0.0 }
0x193e   :  { %v3746_v51 = vpop.eup %3745  ;;  %2571 = vadd.xlane.f32.xlu0 %v2570_v50 }
0x193f   :  { %v2573_v52 = vsel %vm239_vm3, %v3746_v51, 0.0 }
0x1940   :  { %2574 = vadd.xlane.f32.xlu1 %v2573_v52 }
0x19cb   :  { %v2572_v53 = vpop.xlane.xlu0 %2571 }
0x19cc   :  { %3747 = vrcp.f32 %v2572_v53 }
0x19cd   :  { %v2575_v54 = vpop.xlane.xlu1 %2574 }
0x19ce   :  { %3749 = vrcp.f32 %v2575_v54 }
0x19d6   :  { %v3748_v55 = vpop.eup %3747 }
0x19d7   :  { %v2578_v58 = vmul.f32 %v3748_v55, %v3744_v49 }
0x19d8   :  { %v3750_v56 = vpop.eup %3749 }
0x19d9   :  { %v2579_v59 = vmul.f32 %v3750_v56, %v3746_v51 }
0x19db   :  { %v2638_v61 = vpack.c.bf16 %v2579_v59, %v2578_v58 }
0x19dd   :  { %3587 = vmatmul.mubr.msk.bf16.vlgmr.msra.gmra.mrb[80].mxu0 %vm239_vm3, %v2638_v61 }
0x19de   :  { %3606 = vmatprep.mubr.msk.bf16.mxu0 %vm3788_vm1, %v3787_v15 }
0x1ab0   :  { %v2677_v62 = vpop.f32.mrb[80].mxu0 }
0x1ab1   :  { %v2684_v63 = vadd.f32 %v2677_v62, %v2383_v21  ;;  %v3588_v0 = vpop.f32.mrb[81].mxu0 }
0x1ab2   :  { %v2680_v2 = vpop.f32.mrb[82].mxu0 }
0x1ab3   :  { %v2686_v3 = vadd.f32 %v2684_v63, %v4154_v57  ;;  %v2685_v5 = vadd.f32 %v2680_v2, %v2384_v24  ;;  %v3589_v7 = vpop.f32.mrb[83].mxu0  ;;  %v3671_v24 = vld [vmem:[%s4483_s5 + $0x20] sm:$0xff]  }
0x1ab4   :  { %3599 = vmatpush3.bf16.msra.mxu0 %v3671_v24 }
0x1ab5   :  { %v2693_v8 = vadd.f32 %v3137_v1, %v2686_v3  ;;  %v2687_v9 = vadd.f32 %v2685_v5, %v4157_v60  ;;  %3600 = vmatprep.subr.bf16.mxu0 %v3787_v15 }
0x1ab7   :  { %v4415_v10 = vadd.f32 %v3137_v1, %v2687_v9  ;;  %v2695_v11 = vsel %vm35_vm0, %v2693_v8, 0.0 }
0x1ab8   :  { %2696 = vadd.xlane.f32.xlu0 %v2695_v11  ;;  %3601 = vmatpush3.bf16.msra.mxu0 %v3672_v26 }
0x1ab9   :  { %v2698_v12 = vsel %vm35_vm0, %v4415_v10, 0.0  ;;  %3602 = vmatprep.subr.bf16.mxu0 %v3787_v15 }
0x1aba   :  { %2699 = vadd.xlane.f32.xlu1 %v2698_v12 }
0x1abc   :  { %3603 = vmatpush3.bf16.msra.mxu0 %v3673_v43 }
0x1abd   :  { %3604 = vmatprep.subr.bf16.mxu0 %v3787_v15 }
0x1ac0   :  { %3605 = vmatpush3.bf16.msra.mxu0 %v3674_v4 }
0x1b45   :  { %v2697_v13 = vpop.xlane.xlu0 %2696 }
0x1b46   :  { %v2701_v14 = vmul.f32 0.03125, %v2697_v13 }
0x1b47   :  { %v2700_v16 = vpop.xlane.xlu1 %2699 }
0x1b48   :  { %v2703_v17 = vsub.f32 %v2693_v8, %v2701_v14  ;;  %v2702_v18 = vmul.f32 0.03125, %v2700_v16  ;;  %v3160_v14 = vld [vmem:[%s4485_s7 + $0x6] ss:$0 sm:$0xff] }
0x1b4a   :  { %v2704_v57 = vsub.f32 %v4415_v10, %v2702_v18  ;;  %v2705_v19 = vmul.f32 %v2703_v17, %v2703_v17  ;;  %v3161_v18 = vld [vmem:[%s4485_s7 + $0x7] ss:$0 sm:$0xff] }
0x1b4c   :  { %v2707_v20 = vsel %vm35_vm0, %v2705_v19, 0.0  ;;  %v2706_v60 = vmul.f32 %v2704_v57, %v2704_v57 }
0x1b4d   :  { %2708 = vadd.xlane.f32.xlu0 %v2707_v20 }
0x1b4e   :  { %v2710_v21 = vsel %vm35_vm0, %v2706_v60, 0.0 }
0x1b4f   :  { %2711 = vadd.xlane.f32.xlu1 %v2710_v21 }
0x1bda   :  { %v2709_v27 = vpop.xlane.xlu0 %2708 }
0x1bdb   :  { %v2713_v29 = vmul.f32 0.032258064, %v2709_v27 }
0x1bdc   :  { %v2712_v30 = vpop.xlane.xlu1 %2711 }
0x1bdd   :  { %v2715_v31 = vadd.f32 1e-12, %v2713_v29  ;;  %v2714_v28 = vmul.f32 0.032258064, %v2712_v30 }
0x1bdf   :  { %3751 = vrsqrt.f32 %v2715_v31  ;;  %v2716_v37 = vadd.f32 1e-12, %v2714_v28 }
0x1be1   :  { %3753 = vrsqrt.f32 %v2716_v37 }
0x1be9   :  { %v3752_v25 = vpop.eup %3751 }
0x1bea   :  { %v2719_v41 = vmul.f32 %v3752_v25, %v2703_v17 }
0x1beb   :  { %v3754_v39 = vpop.eup %3753 }
0x1bec   :  { %v2720_v42 = vmul.f32 %v3754_v39, %v2704_v57 }
0x1bee   :  { %v2721_v40 = vpack.c.bf16 %v2720_v42, %v2719_v41 }
0x1bf0   :  { %3595 = vmatmul.mubr.msk.bf16.vlgmr.msra.gmra.mrb[84].mxu1 %vm35_vm0, %v2721_v40 }
0x1cc3   :  { %v2781_v45 = vpop.f32.mrb[84].mxu1 }
0x1cc4   :  { %v2782_v33 = vadd.f32 %v3142_v44, %v2781_v45  ;;  %v3596_v6 = vpop.f32.mrb[85].mxu1 }
0x1cc5   :  { %v2784_v34 = vpop.f32.mrb[86].mxu1 }
0x1cc6   :  { %v2785_v32 = vadd.f32 %v3142_v44, %v2784_v34  ;;  %v3597_v35 = vpop.f32.mrb[87].mxu1  ;;  %v2788_v38 = vmax.f32 %v2782_v33, 0.0 }
0x1cc8   :  { %v2789_v36 = vmax.f32 %v2785_v32, 0.0 }
0x1cca   :  { %v2790_v46 = vpack.c.bf16 %v2789_v36, %v2788_v38 }
0x1ccc   :  { %3607 = vmatmul.mubr.msk.bf16.vlgmr.msra.gmra.mrb[84].mxu0 %vm1402_vm4, %v2790_v46 }
0x1d9f   :  { %v2861_v15 = vpop.f32.mrb[84].mxu0 }
0x1da0   :  { %v2868_v48 = vadd.f32 %v2861_v15, %v2693_v8  ;;  %v3608_v49 = vpop.f32.mrb[85].mxu0 }
0x1da1   :  { %v2864_v50 = vpop.f32.mrb[86].mxu0 }
0x1da2   :  { %v2869_v51 = vadd.f32 %v2864_v50, %v4415_v10  ;;  %v3609_v52 = vpop.f32.mrb[87].mxu0  ;;  %v2875_v53 = vadd.f32 %v3159_v47, %v2868_v48 }
0x1da4   :  { %v2879_v54 = vsel %vm35_vm0, %v2875_v53, 0.0  ;;  %v2876_v55 = vadd.f32 %v3159_v47, %v2869_v51 }
0x1da5   :  { %2880 = vadd.xlane.f32.xlu0 %v2879_v54 }
0x1da6   :  { %v2882_v56 = vsel %vm35_vm0, %v2876_v55, 0.0 }
0x1da7   :  { %2883 = vadd.xlane.f32.xlu1 %v2882_v56 }
0x1e32   :  { %v2881_v58 = vpop.xlane.xlu0 %2880 }
0x1e33   :  { %v2885_v59 = vmul.f32 0.03125, %v2881_v58 }
0x1e34   :  { %v2884_v61 = vpop.xlane.xlu1 %2883 }
0x1e35   :  { %v2887_v62 = vsub.f32 %v2875_v53, %v2885_v59  ;;  %v2886_v63 = vmul.f32 0.03125, %v2884_v61 }
0x1e37   :  { %v2888_v0 = vsub.f32 %v2876_v55, %v2886_v63  ;;  %v2889_v1 = vmul.f32 %v2887_v62, %v2887_v62 }
0x1e39   :  { %v2891_v2 = vsel %vm35_vm0, %v2889_v1, 0.0  ;;  %v2890_v3 = vmul.f32 %v2888_v0, %v2888_v0 }
0x1e3a   :  { %2892 = vadd.xlane.f32.xlu0 %v2891_v2 }
0x1e3b   :  { %v2894_v5 = vsel %vm35_vm0, %v2890_v3, 0.0 }
0x1e3c   :  { %2895 = vadd.xlane.f32.xlu1 %v2894_v5 }
0x1ec7   :  { %v2893_v7 = vpop.xlane.xlu0 %2892 }
0x1ec8   :  { %v2897_v8 = vmul.f32 0.032258064, %v2893_v7 }
0x1ec9   :  { %v2896_v9 = vpop.xlane.xlu1 %2895 }
0x1eca   :  { %v2899_v10 = vadd.f32 1e-12, %v2897_v8  ;;  %v2898_v11 = vmul.f32 0.032258064, %v2896_v9 }
0x1ecc   :  { %3755 = vrsqrt.f32 %v2899_v10  ;;  %v2900_v12 = vadd.f32 1e-12, %v2898_v11 }
0x1ece   :  { %3757 = vrsqrt.f32 %v2900_v12 }
0x1ed6   :  { %v3756_v13 = vpop.eup %3755 }
0x1ed7   :  { %v2903_v16 = vmul.f32 %v3756_v13, %v2887_v62 }
0x1ed8   :  { %v3758_v17 = vpop.eup %3757 }
0x1ed9   :  { %v2904_v57 = vmul.f32 %v3758_v17, %v2888_v0  ;;  %v2909_v19 = vmul.f32 %v3160_v14, %v2903_v16 }
0x1edb   :  { %v2910_v20 = vmul.f32 %v3160_v14, %v2904_v57  ;;  %v2915_v60 = vadd.f32 %v3161_v18, %v2909_v19 }
0x1edd   :  { %v2916_v21 = vadd.f32 %v3161_v18, %v2910_v20  ;;  %2917 = vst.msk [vmem:[#allocation2] sm:$0xff] %vm35_vm0, %v2915_v60 }
0x1edf   :  { %2918 = vst.msk [vmem:[#allocation2 + $0x8] sm:$0xff] %vm35_vm0, %v2916_v21 }
0x1ee0   :  { %3774 = shalt.err (!%p3771_p4)
}
0x1ee1   :  { %s3775_s10 = scalar_lea.hbm %s4486_s8, 256 }
0x1ee2   :  { %p3776_p5 = scmp.ne.s32.totalorder %s4486_s8, %s3775_s10  ;;  %p3779_p6 = scmp.lt.u32.totalorder %s3775_s10, %s4486_s8 }
0x1ee4   :  { %p3781_p7 = pnand %p3779_p6, %p3776_p5 }
0x1ee6   :  { %3784 = shalt.err (!%p3781_p7)
}
0x1ee7   :  { %s3790_s13 = smov 128   ;;  %s3791_s14 = smov 8  }
0x1ee8   :  { %2930 = dma.vmem_to_hbm [thread:$0]  %s2925_s30, 256, %s4486_s8, [#allocation3], %s3790_s13, %s3790_s13, %s3791_s14  }
0x1ee9   :  { %3785 = dma.done.wait [#allocation3], 256  }
0x1eea   :  { %3786 = vsyncadd [#allocation3], 4294967040 }
0x1eeb   :  { %2934 = vsyncpa [#allocation3], 1 }

</bundles_post_ra>
